<compile_context>
chip_gen: v7x
topology: tpu7x:2x2x1
jax: 0.10.0
libtpu: 0.0.40
codegen_flags: <defaults>
</compile_context>

<pallas_src>
import functools

import jax
import jax.numpy as jnp
import numpy as np
from jax.experimental import pallas as pl
from jax.experimental.pallas import tpu as pltpu


# ----------------------------------------------------------------------------
# Fused kernel
# ----------------------------------------------------------------------------

def _mbconv_fused_kernel(*refs, k, stride, pad, col0, h, w, h_out, w_out,
                         skip_mode):
    """One batch element: expand 1x1 -> dw kxk -> project 1x1 (+ skip)."""
    if skip_mode == 'conv':
        (x_ref, w0_ref, b0_ref, wdw_ref, b1_ref, w2_ref, bp_ref, wsk_ref,
         o_ref, mid_ref) = refs
    else:
        (x_ref, w0_ref, b0_ref, wdw_ref, b1_ref, w2_ref, bp_ref,
         o_ref, mid_ref) = refs
        wsk_ref = None

    cinp = x_ref.shape[-1]
    cmidp = mid_ref.shape[-1]
    coutp = o_ref.shape[-1]
    scr_w = mid_ref.shape[1]
    RB = 8                      # sublane-aligned row block

    # ---- zero ONLY the halo frame of the scratch (interior is fully ---------
    # ---- overwritten below; the rest of the scratch is never read) ----------
    if pad > 0:
        zrow = jnp.zeros((pad, scr_w, cmidp), jnp.float32)
        zcol = jnp.zeros((h, pad, cmidp), jnp.float32)
        mid_ref[0:pad, :, :] = zrow                              # top rows
        mid_ref[pad + h:pad + h + pad, :, :] = zrow              # bottom rows
        mid_ref[pad:pad + h, col0 - pad:col0, :] = zcol          # left cols
        mid_ref[pad:pad + h, col0 + w:col0 + w + pad, :] = zcol  # right cols

    # ---- expand: 1x1 conv (BN folded) + bias + ReLU, streamed per 8 rows ----
    for r0 in range(0, h, RB):
        rows = min(RB, h - r0)
        xb = x_ref[0, r0:r0 + rows, :, :]                        # (rows,w,cinp)
        xb_mm = xb.reshape(rows * w, cinp).astype(jnp.bfloat16)
        e = jnp.dot(xb_mm, w0_ref[...], preferred_element_type=jnp.float32)
        e = jnp.maximum(e + b0_ref[...], 0.0)                    # (rows*w,cmidp)
        # interior store at sublane-aligned column offset col0
        mid_ref[pad + r0:pad + r0 + rows, col0:col0 + w, :] = (
            e.reshape(rows, w, cmidp))

    # ---- depthwise kxk + ReLU + project 1x1 (+ skip), per 8 output rows -----
    for r0 in range(0, h_out, RB):
        rows = min(RB, h_out - r0)

        def tap(i, j, r0=r0, rows=rows):
            if stride == 1:
                return mid_ref[r0 + i:r0 + i + rows,
                               col0 - pad + j:col0 - pad + j + w_out, :]
            # TODO(synk): stride>1 path is untested at this config; strided ref
            # reads keep the padded slab on the vld path instead of vregs.
            return mid_ref[pl.ds(r0 * stride + i, rows, stride=stride),
                           pl.ds(col0 - pad + j, w_out, stride=stride), :]

        # first tap initialises the accumulator with b1 folded in: no separate
        # zero-fill and no separate full-slab "+ b1" pass.
        acc = tap(0, 0) * wdw_ref[0, 0:1, :] + b1_ref[...]
        for i in range(k):
            for j in range(k):
                if i == 0 and j == 0:
                    continue
                acc = acc + tap(i, j) * wdw_ref[i, j:j + 1, :]
        y = jnp.maximum(acc, 0.0).reshape(rows * w_out, cmidp)

        # project (b2 [+ b3] pre-folded into bp on the host)
        out = jnp.dot(y.astype(jnp.bfloat16), w2_ref[...],
                      preferred_element_type=jnp.float32)
        out = out + bp_ref[...]

        if skip_mode == 'conv':
            xb = x_ref[0, r0:r0 + rows, :, :].reshape(rows * w_out, cinp)
            out = out + jnp.dot(xb.astype(jnp.bfloat16), wsk_ref[...],
                                preferred_element_type=jnp.float32)
        elif skip_mode == 'identity':
            xb = x_ref[0, r0:r0 + rows, :, :].reshape(rows * w_out, cinp)
            out = out + xb.astype(jnp.float32)

        # lane-dense (coutp multiple of 128), sublane-full output store
        o_ref[0, r0:r0 + rows, :, :] = (
            out.reshape(rows, w_out, coutp).astype(o_ref.dtype))


# ----------------------------------------------------------------------------
# Host-side wrapper
# ----------------------------------------------------------------------------

def _round_up(x, m):
    return ((x + m - 1) // m) * m


def _fold_bn(gamma, beta, mean, var, eps):
    scale = gamma / jnp.sqrt(var + eps)
    bias = beta - mean * scale
    return scale, bias


def mbconv_forward(x_nchw, params, *, kernel_size, stride, padding,
                   support_skip=True):
    """Pallas implementation. Input/output in NCHW to mirror PyTorch."""
    k = kernel_size
    x = jnp.transpose(x_nchw, (0, 2, 3, 1)).astype(jnp.float32)  # NCHW -> NHWC
    n, h, w, c_in = x.shape
    c_mid = params['w0'].shape[1]
    c_out = params['w2'].shape[1]

    h_out = (h + 2 * padding - k) // stride + 1
    w_out = (w + 2 * padding - k) // stride + 1

    skip_mode = 'none'
    if support_skip and stride == 1:
        # The residual add requires 'same' spatial output; guard explicitly
        # (the PyTorch module would raise a shape-mismatch error here too).
        if (h_out, w_out) != (h, w):
            raise ValueError(
                "MBConv skip path requires padding == (kernel_size - 1) // 2 "
                "so that the output spatial dims match the input")
        skip_mode = 'identity' if c_in == c_out else 'conv'

    lane = 128
    cmidp = _round_up(c_mid, lane)
    coutp = _round_up(c_out, lane)
    if skip_mode == 'identity':
        # identity residual is added at full output lane width, keep f32
        cinp = coutp
        x_dtype = jnp.float32
    else:
        # x is only consumed through bf16 matmuls: minimal channel padding
        # (sublane multiple) so the per-image DMA is not inflated 32x.
        cinp = max(8, _round_up(c_in, 8))
        x_dtype = jnp.bfloat16

    # depthwise scratch layout: interior starts at a sublane-aligned column,
    # scratch width rounded to a multiple of 8 (sublane dim).
    col0 = _round_up(padding, 8)
    scr_w = _round_up(col0 + w + padding, 8)
    scr_h = h + 2 * padding

    # ---- pad channels; fold BN scale into the conv weights (f32, cast once) -
    xp = jnp.pad(x, ((0, 0), (0, 0), (0, 0), (0, cinp - c_in))).astype(x_dtype)

    def pad2(a, rows, cols, dtype):
        out = jnp.zeros((rows, cols), dtype)
        return out.at[:a.shape[0], :a.shape[1]].set(a.astype(dtype))

    w0 = pad2(params['w0'] * params['s0'][None, :], cinp, cmidp, jnp.bfloat16)
    b0 = pad2(params['b0'][None, :], 1, cmidp, jnp.float32)
    wdw = jnp.zeros((k, k, cmidp), jnp.float32).at[:, :, :c_mid].set(
        params['w_dw'] * params['s1'][None, None, :])
    b1 = pad2(params['b1'][None, :], 1, cmidp, jnp.float32)
    w2 = pad2(params['w2'] * params['s2'][None, :], cmidp, coutp, jnp.bfloat16)
    bproj = params['b2']
    if skip_mode == 'conv':
        bproj = bproj + params['b3']            # fold skip bias into project bias
    bproj = pad2(bproj[None, :], 1, coutp, jnp.float32)

    args = [xp, w0, b0, wdw, b1, w2, bproj]
    # TODO(synk): constant-index weight blocks could be single-buffered with
    # pipeline_mode=pl.Buffered(1) to save VMEM at production channel counts.
    in_specs = [
        pl.BlockSpec((1, h, w, cinp), lambda b: (b, 0, 0, 0)),
        pl.BlockSpec((cinp, cmidp), lambda b: (0, 0)),
        pl.BlockSpec((1, cmidp), lambda b: (0, 0)),
        pl.BlockSpec((k, k, cmidp), lambda b: (0, 0, 0)),
        pl.BlockSpec((1, cmidp), lambda b: (0, 0)),
        pl.BlockSpec((cmidp, coutp), lambda b: (0, 0)),
        pl.BlockSpec((1, coutp), lambda b: (0, 0)),
    ]
    if skip_mode == 'conv':
        wsk = pad2(params['w_skip'] * params['s3'][None, :], cinp, coutp,
                   jnp.bfloat16)
        args.append(wsk)
        in_specs.append(pl.BlockSpec((cinp, coutp), lambda b: (0, 0)))

    # ---- VMEM budget: scratch + double-buffered blocks, with headroom -------
    def nbytes(shape, dtype):
        return int(np.prod(shape)) * np.dtype(dtype).itemsize

    est = nbytes((scr_h, scr_w, cmidp), jnp.float32)
    est += 2 * nbytes((1, h, w, cinp), x_dtype)
    est += 2 * nbytes((1, h_out, w_out, coutp), jnp.float32)
    for a in args[1:]:
        est += 2 * a.size * np.dtype(a.dtype).itemsize
    vmem_limit = int(min(64 * 2**20, max(32 * 2**20, 2 * est)))

    kern = functools.partial(
        _mbconv_fused_kernel, k=k, stride=stride, pad=padding, col0=col0,
        h=h, w=w, h_out=h_out, w_out=w_out, skip_mode=skip_mode)

    out = pl.pallas_call(
        kern,
        out_shape=jax.ShapeDtypeStruct((n, h_out, w_out, coutp), jnp.float32),
        grid=(n,),
        in_specs=in_specs,
        out_specs=pl.BlockSpec((1, h_out, w_out, coutp),
                               lambda b: (b, 0, 0, 0)),
        scratch_shapes=[pltpu.VMEM((scr_h, scr_w, cmidp), jnp.float32)],
        compiler_params=pltpu.CompilerParams(
            dimension_semantics=("parallel",),
            vmem_limit_bytes=vmem_limit),
    )(*args)

    out = out[..., :c_out]                       # drop lane padding
    return jnp.transpose(out, (0, 3, 1, 2))      # NHWC -> NCHW


# ----------------------------------------------------------------------------
# Parameter init (BN in inference mode, folded to per-channel scale/bias)
# ----------------------------------------------------------------------------

def init_mbconv_params(key, c_in, c_out, kernel_size, expansion_factor=3,
                       stride=1, support_skip=True, eps=1e-5):
    t = expansion_factor
    c_mid = c_in * t
    keys = jax.random.split(key, 16)

    def bn_params(k0, k1, k2, k3, c):
        gamma = jax.random.uniform(k0, (c,), jnp.float32, 0.5, 1.5)
        beta = 0.1 * jax.random.normal(k1, (c,), jnp.float32)
        mean = 0.1 * jax.random.normal(k2, (c,), jnp.float32)
        var = jax.random.uniform(k3, (c,), jnp.float32, 0.5, 1.5)
        return _fold_bn(gamma, beta, mean, var, eps)

    p = {}
    p['w0'] = 0.2 * jax.random.normal(keys[0], (c_in, c_mid), jnp.float32)
    p['s0'], p['b0'] = bn_params(keys[1], keys[2], keys[3], keys[4], c_mid)
    p['w_dw'] = 0.2 * jax.random.normal(
        keys[5], (kernel_size, kernel_size, c_mid), jnp.float32)
    p['s1'], p['b1'] = bn_params(keys[6], keys[7], keys[8], keys[9], c_mid)
    p['w2'] = 0.2 * jax.random.normal(keys[10], (c_mid, c_out), jnp.float32)
    p['s2'], p['b2'] = bn_params(keys[11], keys[12], keys[13], keys[14], c_out)
    if support_skip and stride == 1 and c_in != c_out:
        ks = jax.random.split(keys[15], 5)
        p['w_skip'] = 0.2 * jax.random.normal(ks[0], (c_in, c_out), jnp.float32)
        p['s3'], p['b3'] = bn_params(ks[1], ks[2], ks[3], ks[4], c_out)
    return p


# ----------------------------------------------------------------------------
# Pure-JAX f32 reference (for correctness check)
# ----------------------------------------------------------------------------

def mbconv_reference(x_nchw, params, *, kernel_size, stride, padding,
                     support_skip=True):
    x = jnp.transpose(x_nchw, (0, 2, 3, 1))
    c_in = x.shape[-1]
    c_mid = params['w0'].shape[1]
    c_out = params['w2'].shape[1]
    dn = ('NHWC', 'HWIO', 'NHWC')

    def pw(v, w):
        return jax.lax.conv_general_dilated(
            v, w.reshape(1, 1, *w.shape), (1, 1), 'VALID', dimension_numbers=dn)

    y = pw(x, params['w0']) * params['s0'] + params['b0']
    y = jnp.maximum(y, 0.0)

    w_dw = params['w_dw'].reshape(kernel_size, kernel_size, 1, c_mid)
    y = jax.lax.conv_general_dilated(
        y, w_dw, (stride, stride), [(padding, padding), (padding, padding)],
        dimension_numbers=dn, feature_group_count=c_mid)
    y = jnp.maximum(y * params['s1'] + params['b1'], 0.0)

    y = pw(y, params['w2']) * params['s2'] + params['b2']

    if support_skip and stride == 1:
        if c_in == c_out:
            skip = x
        else:
            skip = pw(x, params['w_skip']) * params['s3'] + params['b3']
        y = y + skip
    return jnp.transpose(y, (0, 3, 1, 2))


# ----------------------------------------------------------------------------
# Main
# ----------------------------------------------------------------------------

if __name__ == "__main__":
    C_IN, C_OUT = 4, 8
    KERNEL, STRIDE, PADDING = 3, 1, 1
    EXPANSION = 3

    key = jax.random.PRNGKey(0)
    kx, kp = jax.random.split(key)
    x = jax.random.normal(kx, (2, C_IN, 16, 16), jnp.float32)  # NCHW

    params = init_mbconv_params(kp, C_IN, C_OUT, KERNEL,
                                expansion_factor=EXPANSION,
                                stride=STRIDE, support_skip=True)

    fwd = jax.jit(functools.partial(mbconv_forward, kernel_size=KERNEL,
                                    stride=STRIDE, padding=PADDING,
                                    support_skip=True))
    out = jax.block_until_ready(fwd(x, params))

    ref = jax.block_until_ready(
        mbconv_reference(x, params, kernel_size=KERNEL, stride=STRIDE,
                         padding=PADDING, support_skip=True))

    assert out.shape == (2, C_OUT, 16, 16), out.shape
    # bf16 MXU matmuls vs. an all-f32 reference -> relaxed tolerance.
    np.testing.assert_allclose(np.asarray(out), np.asarray(ref),
                               rtol=2e-2, atol=2e-2)
    print("KERNEL_OK")
</pallas_src>

<mosaic_0001>
module attributes {stable_mosaic.version = 11 : i64} {
  func.func @_mbconv_fused_kernel(%arg0: i32, %arg1: memref<1x16x16x8xbf16, #tpu.memory_space<vmem>>, %arg2: memref<8x128xbf16, #tpu.memory_space<vmem>>, %arg3: memref<1x128xf32, #tpu.memory_space<vmem>>, %arg4: memref<3x3x128xf32, #tpu.memory_space<vmem>>, %arg5: memref<1x128xf32, #tpu.memory_space<vmem>>, %arg6: memref<128x128xbf16, #tpu.memory_space<vmem>>, %arg7: memref<1x128xf32, #tpu.memory_space<vmem>>, %arg8: memref<8x128xbf16, #tpu.memory_space<vmem>>, %arg9: memref<1x16x16x128xf32, #tpu.memory_space<vmem>>, %arg10: memref<18x32x128xf32, #tpu.memory_space<vmem>>) attributes {dimension_semantics = [#tpu.dimension_semantics<parallel>], iteration_bounds = array<i64: 2>, scalar_prefetch = 0 : i64, scratch_operands = 1 : i64, tpu.core_type = #tpu.core_type<tc>, window_params = [{transform_indices = @transform_0, window_bounds = array<i64: 1, 16, 16, 8>}, {pipeline_mode = #tpu.pipeline_mode<synchronous>, transform_indices = @transform_1, window_bounds = array<i64: 8, 128>}, {pipeline_mode = #tpu.pipeline_mode<synchronous>, transform_indices = @transform_2, window_bounds = array<i64: 1, 128>}, {pipeline_mode = #tpu.pipeline_mode<synchronous>, transform_indices = @transform_3, window_bounds = array<i64: 3, 3, 128>}, {pipeline_mode = #tpu.pipeline_mode<synchronous>, transform_indices = @transform_4, window_bounds = array<i64: 1, 128>}, {pipeline_mode = #tpu.pipeline_mode<synchronous>, transform_indices = @transform_5, window_bounds = array<i64: 128, 128>}, {pipeline_mode = #tpu.pipeline_mode<synchronous>, transform_indices = @transform_6, window_bounds = array<i64: 1, 128>}, {pipeline_mode = #tpu.pipeline_mode<synchronous>, transform_indices = @transform_7, window_bounds = array<i64: 8, 128>}, {transform_indices = @transform_8, window_bounds = array<i64: 1, 16, 16, 128>}]} {
    %cst = arith.constant 0.000000e+00 : f32
    %0 = vector.broadcast %cst : f32 to vector<1x32x128xf32>
    %cst_0 = arith.constant 0.000000e+00 : f32
    %1 = vector.broadcast %cst_0 : f32 to vector<16x1x128xf32>
    %c0 = arith.constant 0 : index
    %c0_1 = arith.constant 0 : index
    %c0_2 = arith.constant 0 : index
    %2 = vector.load %arg10[%c0, %c0_1, %c0_2] : memref<18x32x128xf32, #tpu.memory_space<vmem>>, vector<1x32x128xf32>
    tpu.vector_store %arg10[%c0, %c0_1, %c0_2], %0 {strides = array<i32>} : memref<18x32x128xf32, #tpu.memory_space<vmem>>, vector<1x32x128xf32>,
    %c17 = arith.constant 17 : index
    %c0_3 = arith.constant 0 : index
    %c0_4 = arith.constant 0 : index
    %3 = vector.load %arg10[%c17, %c0_3, %c0_4] : memref<18x32x128xf32, #tpu.memory_space<vmem>>, vector<1x32x128xf32>
    tpu.vector_store %arg10[%c17, %c0_3, %c0_4], %0 {strides = array<i32>} : memref<18x32x128xf32, #tpu.memory_space<vmem>>, vector<1x32x128xf32>,
    %c1 = arith.constant 1 : index
    %c7 = arith.constant 7 : index
    %c0_5 = arith.constant 0 : index
    %4 = vector.load %arg10[%c1, %c7, %c0_5] : memref<18x32x128xf32, #tpu.memory_space<vmem>>, vector<16x1x128xf32>
    tpu.vector_store %arg10[%c1, %c7, %c0_5], %1 {strides = array<i32>} : memref<18x32x128xf32, #tpu.memory_space<vmem>>, vector<16x1x128xf32>,
    %c1_6 = arith.constant 1 : index
    %c24 = arith.constant 24 : index
    %c0_7 = arith.constant 0 : index
    %5 = vector.load %arg10[%c1_6, %c24, %c0_7] : memref<18x32x128xf32, #tpu.memory_space<vmem>>, vector<16x1x128xf32>
    tpu.vector_store %arg10[%c1_6, %c24, %c0_7], %1 {strides = array<i32>} : memref<18x32x128xf32, #tpu.memory_space<vmem>>, vector<16x1x128xf32>,
    %c0_8 = arith.constant 0 : index
    %c0_9 = arith.constant 0 : index
    %c0_10 = arith.constant 0 : index
    %c0_11 = arith.constant 0 : index
    %6 = vector.load %arg1[%c0_8, %c0_9, %c0_10, %c0_11] : memref<1x16x16x8xbf16, #tpu.memory_space<vmem>>, vector<1x8x16x8xbf16>
    %7 = vector.shape_cast %6 : vector<1x8x16x8xbf16> to vector<8x16x8xbf16>
    %8 = vector.shape_cast %7 : vector<8x16x8xbf16> to vector<128x8xbf16>
    %c0_12 = arith.constant 0 : index
    %c0_13 = arith.constant 0 : index
    %9 = vector.load %arg2[%c0_12, %c0_13] : memref<8x128xbf16, #tpu.memory_space<vmem>>, vector<8x128xbf16>
    %cst_14 = arith.constant dense<0.000000e+00> : vector<128x128xf32>
    %10 = tpu.matmul %8, %9, %cst_14 {dimension_numbers = #tpu.dot_dimension_numbers<[1], [0], [0], [1], [0, 0, 1, 1], [], []>} : vector<128x8xbf16>, vector<8x128xbf16>, vector<128x128xf32> -> vector<128x128xf32>
    %c0_15 = arith.constant 0 : index
    %c0_16 = arith.constant 0 : index
    %11 = vector.load %arg3[%c0_15, %c0_16] : memref<1x128xf32, #tpu.memory_space<vmem>>, vector<1x128xf32>
    %12 = vector.broadcast %11 : vector<1x128xf32> to vector<128x128xf32>
    %13 = arith.addf %10, %12 : vector<128x128xf32>
    %cst_17 = arith.constant 0.000000e+00 : f32
    %14 = vector.broadcast %cst_17 : f32 to vector<128x128xf32>
    %15 = arith.maximumf %13, %14 : vector<128x128xf32>
    %16 = vector.shape_cast %15 : vector<128x128xf32> to vector<8x16x128xf32>
    %c1_18 = arith.constant 1 : index
    %c8 = arith.constant 8 : index
    %c0_19 = arith.constant 0 : index
    %17 = vector.load %arg10[%c1_18, %c8, %c0_19] : memref<18x32x128xf32, #tpu.memory_space<vmem>>, vector<8x16x128xf32>
    tpu.vector_store %arg10[%c1_18, %c8, %c0_19], %16 {strides = array<i32>} : memref<18x32x128xf32, #tpu.memory_space<vmem>>, vector<8x16x128xf32>,
    %c0_20 = arith.constant 0 : index
    %c8_21 = arith.constant 8 : index
    %c0_22 = arith.constant 0 : index
    %c0_23 = arith.constant 0 : index
    %18 = vector.load %arg1[%c0_20, %c8_21, %c0_22, %c0_23] : memref<1x16x16x8xbf16, #tpu.memory_space<vmem>>, vector<1x8x16x8xbf16>
    %19 = vector.shape_cast %18 : vector<1x8x16x8xbf16> to vector<8x16x8xbf16>
    %20 = vector.shape_cast %19 : vector<8x16x8xbf16> to vector<128x8xbf16>
    %c0_24 = arith.constant 0 : index
    %c0_25 = arith.constant 0 : index
    %21 = vector.load %arg2[%c0_24, %c0_25] : memref<8x128xbf16, #tpu.memory_space<vmem>>, vector<8x128xbf16>
    %cst_26 = arith.constant dense<0.000000e+00> : vector<128x128xf32>
    %22 = tpu.matmul %20, %21, %cst_26 {dimension_numbers = #tpu.dot_dimension_numbers<[1], [0], [0], [1], [0, 0, 1, 1], [], []>} : vector<128x8xbf16>, vector<8x128xbf16>, vector<128x128xf32> -> vector<128x128xf32>
    %c0_27 = arith.constant 0 : index
    %c0_28 = arith.constant 0 : index
    %23 = vector.load %arg3[%c0_27, %c0_28] : memref<1x128xf32, #tpu.memory_space<vmem>>, vector<1x128xf32>
    %24 = vector.broadcast %23 : vector<1x128xf32> to vector<128x128xf32>
    %25 = arith.addf %22, %24 : vector<128x128xf32>
    %cst_29 = arith.constant 0.000000e+00 : f32
    %26 = vector.broadcast %cst_29 : f32 to vector<128x128xf32>
    %27 = arith.maximumf %25, %26 : vector<128x128xf32>
    %28 = vector.shape_cast %27 : vector<128x128xf32> to vector<8x16x128xf32>
    %c9 = arith.constant 9 : index
    %c8_30 = arith.constant 8 : index
    %c0_31 = arith.constant 0 : index
    %29 = vector.load %arg10[%c9, %c8_30, %c0_31] : memref<18x32x128xf32, #tpu.memory_space<vmem>>, vector<8x16x128xf32>
    tpu.vector_store %arg10[%c9, %c8_30, %c0_31], %28 {strides = array<i32>} : memref<18x32x128xf32, #tpu.memory_space<vmem>>, vector<8x16x128xf32>,
    %c0_32 = arith.constant 0 : index
    %c7_33 = arith.constant 7 : index
    %c0_34 = arith.constant 0 : index
    %30 = vector.load %arg10[%c0_32, %c7_33, %c0_34] : memref<18x32x128xf32, #tpu.memory_space<vmem>>, vector<8x16x128xf32>
    %c0_35 = arith.constant 0 : index
    %c0_36 = arith.constant 0 : index
    %c0_37 = arith.constant 0 : index
    %31 = vector.load %arg4[%c0_35, %c0_36, %c0_37] : memref<3x3x128xf32, #tpu.memory_space<vmem>>, vector<1x1x128xf32>
    %32 = vector.shape_cast %31 : vector<1x1x128xf32> to vector<1x128xf32>
    %33 = vector.shape_cast %32 : vector<1x128xf32> to vector<1x1x128xf32>
    %34 = vector.broadcast %33 : vector<1x1x128xf32> to vector<8x16x128xf32>
    %35 = arith.mulf %30, %34 : vector<8x16x128xf32>
    %c0_38 = arith.constant 0 : index
    %c0_39 = arith.constant 0 : index
    %36 = vector.load %arg5[%c0_38, %c0_39] : memref<1x128xf32, #tpu.memory_space<vmem>>, vector<1x128xf32>
    %37 = vector.shape_cast %36 : vector<1x128xf32> to vector<1x1x128xf32>
    %38 = vector.broadcast %37 : vector<1x1x128xf32> to vector<8x16x128xf32>
    %39 = arith.addf %35, %38 : vector<8x16x128xf32>
    %c0_40 = arith.constant 0 : index
    %c8_41 = arith.constant 8 : index
    %c0_42 = arith.constant 0 : index
    %40 = vector.load %arg10[%c0_40, %c8_41, %c0_42] : memref<18x32x128xf32, #tpu.memory_space<vmem>>, vector<8x16x128xf32>
    %c0_43 = arith.constant 0 : index
    %c1_44 = arith.constant 1 : index
    %c0_45 = arith.constant 0 : index
    %41 = vector.load %arg4[%c0_43, %c1_44, %c0_45] : memref<3x3x128xf32, #tpu.memory_space<vmem>>, vector<1x1x128xf32>
    %42 = vector.shape_cast %41 : vector<1x1x128xf32> to vector<1x128xf32>
    %43 = vector.shape_cast %42 : vector<1x128xf32> to vector<1x1x128xf32>
    %44 = vector.broadcast %43 : vector<1x1x128xf32> to vector<8x16x128xf32>
    %45 = arith.mulf %40, %44 : vector<8x16x128xf32>
    %46 = arith.addf %39, %45 : vector<8x16x128xf32>
    %c0_46 = arith.constant 0 : index
    %c9_47 = arith.constant 9 : index
    %c0_48 = arith.constant 0 : index
    %47 = vector.load %arg10[%c0_46, %c9_47, %c0_48] : memref<18x32x128xf32, #tpu.memory_space<vmem>>, vector<8x16x128xf32>
    %c0_49 = arith.constant 0 : index
    %c2 = arith.constant 2 : index
    %c0_50 = arith.constant 0 : index
    %48 = vector.load %arg4[%c0_49, %c2, %c0_50] : memref<3x3x128xf32, #tpu.memory_space<vmem>>, vector<1x1x128xf32>
    %49 = vector.shape_cast %48 : vector<1x1x128xf32> to vector<1x128xf32>
    %50 = vector.shape_cast %49 : vector<1x128xf32> to vector<1x1x128xf32>
    %51 = vector.broadcast %50 : vector<1x1x128xf32> to vector<8x16x128xf32>
    %52 = arith.mulf %47, %51 : vector<8x16x128xf32>
    %53 = arith.addf %46, %52 : vector<8x16x128xf32>
    %c1_51 = arith.constant 1 : index
    %c7_52 = arith.constant 7 : index
    %c0_53 = arith.constant 0 : index
    %54 = vector.load %arg10[%c1_51, %c7_52, %c0_53] : memref<18x32x128xf32, #tpu.memory_space<vmem>>, vector<8x16x128xf32>
    %c1_54 = arith.constant 1 : index
    %c0_55 = arith.constant 0 : index
    %c0_56 = arith.constant 0 : index
    %55 = vector.load %arg4[%c1_54, %c0_55, %c0_56] : memref<3x3x128xf32, #tpu.memory_space<vmem>>, vector<1x1x128xf32>
    %56 = vector.shape_cast %55 : vector<1x1x128xf32> to vector<1x128xf32>
    %57 = vector.shape_cast %56 : vector<1x128xf32> to vector<1x1x128xf32>
    %58 = vector.broadcast %57 : vector<1x1x128xf32> to vector<8x16x128xf32>
    %59 = arith.mulf %54, %58 : vector<8x16x128xf32>
    %60 = arith.addf %53, %59 : vector<8x16x128xf32>
    %c1_57 = arith.constant 1 : index
    %c8_58 = arith.constant 8 : index
    %c0_59 = arith.constant 0 : index
    %61 = vector.load %arg10[%c1_57, %c8_58, %c0_59] : memref<18x32x128xf32, #tpu.memory_space<vmem>>, vector<8x16x128xf32>
    %c1_60 = arith.constant 1 : index
    %c1_61 = arith.constant 1 : index
    %c0_62 = arith.constant 0 : index
    %62 = vector.load %arg4[%c1_60, %c1_61, %c0_62] : memref<3x3x128xf32, #tpu.memory_space<vmem>>, vector<1x1x128xf32>
    %63 = vector.shape_cast %62 : vector<1x1x128xf32> to vector<1x128xf32>
    %64 = vector.shape_cast %63 : vector<1x128xf32> to vector<1x1x128xf32>
    %65 = vector.broadcast %64 : vector<1x1x128xf32> to vector<8x16x128xf32>
    %66 = arith.mulf %61, %65 : vector<8x16x128xf32>
    %67 = arith.addf %60, %66 : vector<8x16x128xf32>
    %c1_63 = arith.constant 1 : index
    %c9_64 = arith.constant 9 : index
    %c0_65 = arith.constant 0 : index
    %68 = vector.load %arg10[%c1_63, %c9_64, %c0_65] : memref<18x32x128xf32, #tpu.memory_space<vmem>>, vector<8x16x128xf32>
    %c1_66 = arith.constant 1 : index
    %c2_67 = arith.constant 2 : index
    %c0_68 = arith.constant 0 : index
    %69 = vector.load %arg4[%c1_66, %c2_67, %c0_68] : memref<3x3x128xf32, #tpu.memory_space<vmem>>, vector<1x1x128xf32>
    %70 = vector.shape_cast %69 : vector<1x1x128xf32> to vector<1x128xf32>
    %71 = vector.shape_cast %70 : vector<1x128xf32> to vector<1x1x128xf32>
    %72 = vector.broadcast %71 : vector<1x1x128xf32> to vector<8x16x128xf32>
    %73 = arith.mulf %68, %72 : vector<8x16x128xf32>
    %74 = arith.addf %67, %73 : vector<8x16x128xf32>
    %c2_69 = arith.constant 2 : index
    %c7_70 = arith.constant 7 : index
    %c0_71 = arith.constant 0 : index
    %75 = vector.load %arg10[%c2_69, %c7_70, %c0_71] : memref<18x32x128xf32, #tpu.memory_space<vmem>>, vector<8x16x128xf32>
    %c2_72 = arith.constant 2 : index
    %c0_73 = arith.constant 0 : index
    %c0_74 = arith.constant 0 : index
    %76 = vector.load %arg4[%c2_72, %c0_73, %c0_74] : memref<3x3x128xf32, #tpu.memory_space<vmem>>, vector<1x1x128xf32>
    %77 = vector.shape_cast %76 : vector<1x1x128xf32> to vector<1x128xf32>
    %78 = vector.shape_cast %77 : vector<1x128xf32> to vector<1x1x128xf32>
    %79 = vector.broadcast %78 : vector<1x1x128xf32> to vector<8x16x128xf32>
    %80 = arith.mulf %75, %79 : vector<8x16x128xf32>
    %81 = arith.addf %74, %80 : vector<8x16x128xf32>
    %c2_75 = arith.constant 2 : index
    %c8_76 = arith.constant 8 : index
    %c0_77 = arith.constant 0 : index
    %82 = vector.load %arg10[%c2_75, %c8_76, %c0_77] : memref<18x32x128xf32, #tpu.memory_space<vmem>>, vector<8x16x128xf32>
    %c2_78 = arith.constant 2 : index
    %c1_79 = arith.constant 1 : index
    %c0_80 = arith.constant 0 : index
    %83 = vector.load %arg4[%c2_78, %c1_79, %c0_80] : memref<3x3x128xf32, #tpu.memory_space<vmem>>, vector<1x1x128xf32>
    %84 = vector.shape_cast %83 : vector<1x1x128xf32> to vector<1x128xf32>
    %85 = vector.shape_cast %84 : vector<1x128xf32> to vector<1x1x128xf32>
    %86 = vector.broadcast %85 : vector<1x1x128xf32> to vector<8x16x128xf32>
    %87 = arith.mulf %82, %86 : vector<8x16x128xf32>
    %88 = arith.addf %81, %87 : vector<8x16x128xf32>
    %c2_81 = arith.constant 2 : index
    %c9_82 = arith.constant 9 : index
    %c0_83 = arith.constant 0 : index
    %89 = vector.load %arg10[%c2_81, %c9_82, %c0_83] : memref<18x32x128xf32, #tpu.memory_space<vmem>>, vector<8x16x128xf32>
    %c2_84 = arith.constant 2 : index
    %c2_85 = arith.constant 2 : index
    %c0_86 = arith.constant 0 : index
    %90 = vector.load %arg4[%c2_84, %c2_85, %c0_86] : memref<3x3x128xf32, #tpu.memory_space<vmem>>, vector<1x1x128xf32>
    %91 = vector.shape_cast %90 : vector<1x1x128xf32> to vector<1x128xf32>
    %92 = vector.shape_cast %91 : vector<1x128xf32> to vector<1x1x128xf32>
    %93 = vector.broadcast %92 : vector<1x1x128xf32> to vector<8x16x128xf32>
    %94 = arith.mulf %89, %93 : vector<8x16x128xf32>
    %95 = arith.addf %88, %94 : vector<8x16x128xf32>
    %cst_87 = arith.constant 0.000000e+00 : f32
    %96 = vector.broadcast %cst_87 : f32 to vector<8x16x128xf32>
    %97 = arith.maximumf %95, %96 : vector<8x16x128xf32>
    %98 = vector.shape_cast %97 : vector<8x16x128xf32> to vector<128x128xf32>
    %99 = arith.truncf %98 : vector<128x128xf32> to vector<128x128xbf16>
    %c0_88 = arith.constant 0 : index
    %c0_89 = arith.constant 0 : index
    %100 = vector.load %arg6[%c0_88, %c0_89] : memref<128x128xbf16, #tpu.memory_space<vmem>>, vector<128x128xbf16>
    %cst_90 = arith.constant dense<0.000000e+00> : vector<128x128xf32>
    %101 = tpu.matmul %99, %100, %cst_90 {dimension_numbers = #tpu.dot_dimension_numbers<[1], [0], [0], [1], [0, 0, 1, 1], [], []>} : vector<128x128xbf16>, vector<128x128xbf16>, vector<128x128xf32> -> vector<128x128xf32>
    %c0_91 = arith.constant 0 : index
    %c0_92 = arith.constant 0 : index
    %102 = vector.load %arg7[%c0_91, %c0_92] : memref<1x128xf32, #tpu.memory_space<vmem>>, vector<1x128xf32>
    %103 = vector.broadcast %102 : vector<1x128xf32> to vector<128x128xf32>
    %104 = arith.addf %101, %103 : vector<128x128xf32>
    %c0_93 = arith.constant 0 : index
    %c0_94 = arith.constant 0 : index
    %c0_95 = arith.constant 0 : index
    %c0_96 = arith.constant 0 : index
    %105 = vector.load %arg1[%c0_93, %c0_94, %c0_95, %c0_96] : memref<1x16x16x8xbf16, #tpu.memory_space<vmem>>, vector<1x8x16x8xbf16>
    %106 = vector.shape_cast %105 : vector<1x8x16x8xbf16> to vector<8x16x8xbf16>
    %107 = vector.shape_cast %106 : vector<8x16x8xbf16> to vector<128x8xbf16>
    %c0_97 = arith.constant 0 : index
    %c0_98 = arith.constant 0 : index
    %108 = vector.load %arg8[%c0_97, %c0_98] : memref<8x128xbf16, #tpu.memory_space<vmem>>, vector<8x128xbf16>
    %cst_99 = arith.constant dense<0.000000e+00> : vector<128x128xf32>
    %109 = tpu.matmul %107, %108, %cst_99 {dimension_numbers = #tpu.dot_dimension_numbers<[1], [0], [0], [1], [0, 0, 1, 1], [], []>} : vector<128x8xbf16>, vector<8x128xbf16>, vector<128x128xf32> -> vector<128x128xf32>
    %110 = arith.addf %104, %109 : vector<128x128xf32>
    %111 = vector.shape_cast %110 : vector<128x128xf32> to vector<8x16x128xf32>
    %c0_100 = arith.constant 0 : index
    %c0_101 = arith.constant 0 : index
    %c0_102 = arith.constant 0 : index
    %c0_103 = arith.constant 0 : index
    %112 = vector.load %arg9[%c0_100, %c0_101, %c0_102, %c0_103] : memref<1x16x16x128xf32, #tpu.memory_space<vmem>>, vector<1x8x16x128xf32>
    %113 = vector.shape_cast %112 : vector<1x8x16x128xf32> to vector<8x16x128xf32>
    %114 = vector.shape_cast %111 : vector<8x16x128xf32> to vector<1x8x16x128xf32>
    tpu.vector_store %arg9[%c0_100, %c0_101, %c0_102, %c0_103], %114 {strides = array<i32>} : memref<1x16x16x128xf32, #tpu.memory_space<vmem>>, vector<1x8x16x128xf32>,
    %c8_104 = arith.constant 8 : index
    %c7_105 = arith.constant 7 : index
    %c0_106 = arith.constant 0 : index
    %115 = vector.load %arg10[%c8_104, %c7_105, %c0_106] : memref<18x32x128xf32, #tpu.memory_space<vmem>>, vector<8x16x128xf32>
    %c0_107 = arith.constant 0 : index
    %c0_108 = arith.constant 0 : index
    %c0_109 = arith.constant 0 : index
    %116 = vector.load %arg4[%c0_107, %c0_108, %c0_109] : memref<3x3x128xf32, #tpu.memory_space<vmem>>, vector<1x1x128xf32>
    %117 = vector.shape_cast %116 : vector<1x1x128xf32> to vector<1x128xf32>
    %118 = vector.shape_cast %117 : vector<1x128xf32> to vector<1x1x128xf32>
    %119 = vector.broadcast %118 : vector<1x1x128xf32> to vector<8x16x128xf32>
    %120 = arith.mulf %115, %119 : vector<8x16x128xf32>
    %c0_110 = arith.constant 0 : index
    %c0_111 = arith.constant 0 : index
    %121 = vector.load %arg5[%c0_110, %c0_111] : memref<1x128xf32, #tpu.memory_space<vmem>>, vector<1x128xf32>
    %122 = vector.shape_cast %121 : vector<1x128xf32> to vector<1x1x128xf32>
    %123 = vector.broadcast %122 : vector<1x1x128xf32> to vector<8x16x128xf32>
    %124 = arith.addf %120, %123 : vector<8x16x128xf32>
    %c8_112 = arith.constant 8 : index
    %c8_113 = arith.constant 8 : index
    %c0_114 = arith.constant 0 : index
    %125 = vector.load %arg10[%c8_112, %c8_113, %c0_114] : memref<18x32x128xf32, #tpu.memory_space<vmem>>, vector<8x16x128xf32>
    %c0_115 = arith.constant 0 : index
    %c1_116 = arith.constant 1 : index
    %c0_117 = arith.constant 0 : index
    %126 = vector.load %arg4[%c0_115, %c1_116, %c0_117] : memref<3x3x128xf32, #tpu.memory_space<vmem>>, vector<1x1x128xf32>
    %127 = vector.shape_cast %126 : vector<1x1x128xf32> to vector<1x128xf32>
    %128 = vector.shape_cast %127 : vector<1x128xf32> to vector<1x1x128xf32>
    %129 = vector.broadcast %128 : vector<1x1x128xf32> to vector<8x16x128xf32>
    %130 = arith.mulf %125, %129 : vector<8x16x128xf32>
    %131 = arith.addf %124, %130 : vector<8x16x128xf32>
    %c8_118 = arith.constant 8 : index
    %c9_119 = arith.constant 9 : index
    %c0_120 = arith.constant 0 : index
    %132 = vector.load %arg10[%c8_118, %c9_119, %c0_120] : memref<18x32x128xf32, #tpu.memory_space<vmem>>, vector<8x16x128xf32>
    %c0_121 = arith.constant 0 : index
    %c2_122 = arith.constant 2 : index
    %c0_123 = arith.constant 0 : index
    %133 = vector.load %arg4[%c0_121, %c2_122, %c0_123] : memref<3x3x128xf32, #tpu.memory_space<vmem>>, vector<1x1x128xf32>
    %134 = vector.shape_cast %133 : vector<1x1x128xf32> to vector<1x128xf32>
    %135 = vector.shape_cast %134 : vector<1x128xf32> to vector<1x1x128xf32>
    %136 = vector.broadcast %135 : vector<1x1x128xf32> to vector<8x16x128xf32>
    %137 = arith.mulf %132, %136 : vector<8x16x128xf32>
    %138 = arith.addf %131, %137 : vector<8x16x128xf32>
    %c9_124 = arith.constant 9 : index
    %c7_125 = arith.constant 7 : index
    %c0_126 = arith.constant 0 : index
    %139 = vector.load %arg10[%c9_124, %c7_125, %c0_126] : memref<18x32x128xf32, #tpu.memory_space<vmem>>, vector<8x16x128xf32>
    %c1_127 = arith.constant 1 : index
    %c0_128 = arith.constant 0 : index
    %c0_129 = arith.constant 0 : index
    %140 = vector.load %arg4[%c1_127, %c0_128, %c0_129] : memref<3x3x128xf32, #tpu.memory_space<vmem>>, vector<1x1x128xf32>
    %141 = vector.shape_cast %140 : vector<1x1x128xf32> to vector<1x128xf32>
    %142 = vector.shape_cast %141 : vector<1x128xf32> to vector<1x1x128xf32>
    %143 = vector.broadcast %142 : vector<1x1x128xf32> to vector<8x16x128xf32>
    %144 = arith.mulf %139, %143 : vector<8x16x128xf32>
    %145 = arith.addf %138, %144 : vector<8x16x128xf32>
    %c9_130 = arith.constant 9 : index
    %c8_131 = arith.constant 8 : index
    %c0_132 = arith.constant 0 : index
    %146 = vector.load %arg10[%c9_130, %c8_131, %c0_132] : memref<18x32x128xf32, #tpu.memory_space<vmem>>, vector<8x16x128xf32>
    %c1_133 = arith.constant 1 : index
    %c1_134 = arith.constant 1 : index
    %c0_135 = arith.constant 0 : index
    %147 = vector.load %arg4[%c1_133, %c1_134, %c0_135] : memref<3x3x128xf32, #tpu.memory_space<vmem>>, vector<1x1x128xf32>
    %148 = vector.shape_cast %147 : vector<1x1x128xf32> to vector<1x128xf32>
    %149 = vector.shape_cast %148 : vector<1x128xf32> to vector<1x1x128xf32>
    %150 = vector.broadcast %149 : vector<1x1x128xf32> to vector<8x16x128xf32>
    %151 = arith.mulf %146, %150 : vector<8x16x128xf32>
    %152 = arith.addf %145, %151 : vector<8x16x128xf32>
    %c9_136 = arith.constant 9 : index
    %c9_137 = arith.constant 9 : index
    %c0_138 = arith.constant 0 : index
    %153 = vector.load %arg10[%c9_136, %c9_137, %c0_138] : memref<18x32x128xf32, #tpu.memory_space<vmem>>, vector<8x16x128xf32>
    %c1_139 = arith.constant 1 : index
    %c2_140 = arith.constant 2 : index
    %c0_141 = arith.constant 0 : index
    %154 = vector.load %arg4[%c1_139, %c2_140, %c0_141] : memref<3x3x128xf32, #tpu.memory_space<vmem>>, vector<1x1x128xf32>
    %155 = vector.shape_cast %154 : vector<1x1x128xf32> to vector<1x128xf32>
    %156 = vector.shape_cast %155 : vector<1x128xf32> to vector<1x1x128xf32>
    %157 = vector.broadcast %156 : vector<1x1x128xf32> to vector<8x16x128xf32>
    %158 = arith.mulf %153, %157 : vector<8x16x128xf32>
    %159 = arith.addf %152, %158 : vector<8x16x128xf32>
    %c10 = arith.constant 10 : index
    %c7_142 = arith.constant 7 : index
    %c0_143 = arith.constant 0 : index
    %160 = vector.load %arg10[%c10, %c7_142, %c0_143] : memref<18x32x128xf32, #tpu.memory_space<vmem>>, vector<8x16x128xf32>
    %c2_144 = arith.constant 2 : index
    %c0_145 = arith.constant 0 : index
    %c0_146 = arith.constant 0 : index
    %161 = vector.load %arg4[%c2_144, %c0_145, %c0_146] : memref<3x3x128xf32, #tpu.memory_space<vmem>>, vector<1x1x128xf32>
    %162 = vector.shape_cast %161 : vector<1x1x128xf32> to vector<1x128xf32>
    %163 = vector.shape_cast %162 : vector<1x128xf32> to vector<1x1x128xf32>
    %164 = vector.broadcast %163 : vector<1x1x128xf32> to vector<8x16x128xf32>
    %165 = arith.mulf %160, %164 : vector<8x16x128xf32>
    %166 = arith.addf %159, %165 : vector<8x16x128xf32>
    %c10_147 = arith.constant 10 : index
    %c8_148 = arith.constant 8 : index
    %c0_149 = arith.constant 0 : index
    %167 = vector.load %arg10[%c10_147, %c8_148, %c0_149] : memref<18x32x128xf32, #tpu.memory_space<vmem>>, vector<8x16x128xf32>
    %c2_150 = arith.constant 2 : index
    %c1_151 = arith.constant 1 : index
    %c0_152 = arith.constant 0 : index
    %168 = vector.load %arg4[%c2_150, %c1_151, %c0_152] : memref<3x3x128xf32, #tpu.memory_space<vmem>>, vector<1x1x128xf32>
    %169 = vector.shape_cast %168 : vector<1x1x128xf32> to vector<1x128xf32>
    %170 = vector.shape_cast %169 : vector<1x128xf32> to vector<1x1x128xf32>
    %171 = vector.broadcast %170 : vector<1x1x128xf32> to vector<8x16x128xf32>
    %172 = arith.mulf %167, %171 : vector<8x16x128xf32>
    %173 = arith.addf %166, %172 : vector<8x16x128xf32>
    %c10_153 = arith.constant 10 : index
    %c9_154 = arith.constant 9 : index
    %c0_155 = arith.constant 0 : index
    %174 = vector.load %arg10[%c10_153, %c9_154, %c0_155] : memref<18x32x128xf32, #tpu.memory_space<vmem>>, vector<8x16x128xf32>
    %c2_156 = arith.constant 2 : index
    %c2_157 = arith.constant 2 : index
    %c0_158 = arith.constant 0 : index
    %175 = vector.load %arg4[%c2_156, %c2_157, %c0_158] : memref<3x3x128xf32, #tpu.memory_space<vmem>>, vector<1x1x128xf32>
    %176 = vector.shape_cast %175 : vector<1x1x128xf32> to vector<1x128xf32>
    %177 = vector.shape_cast %176 : vector<1x128xf32> to vector<1x1x128xf32>
    %178 = vector.broadcast %177 : vector<1x1x128xf32> to vector<8x16x128xf32>
    %179 = arith.mulf %174, %178 : vector<8x16x128xf32>
    %180 = arith.addf %173, %179 : vector<8x16x128xf32>
    %cst_159 = arith.constant 0.000000e+00 : f32
    %181 = vector.broadcast %cst_159 : f32 to vector<8x16x128xf32>
    %182 = arith.maximumf %180, %181 : vector<8x16x128xf32>
    %183 = vector.shape_cast %182 : vector<8x16x128xf32> to vector<128x128xf32>
    %184 = arith.truncf %183 : vector<128x128xf32> to vector<128x128xbf16>
    %c0_160 = arith.constant 0 : index
    %c0_161 = arith.constant 0 : index
    %185 = vector.load %arg6[%c0_160, %c0_161] : memref<128x128xbf16, #tpu.memory_space<vmem>>, vector<128x128xbf16>
    %cst_162 = arith.constant dense<0.000000e+00> : vector<128x128xf32>
    %186 = tpu.matmul %184, %185, %cst_162 {dimension_numbers = #tpu.dot_dimension_numbers<[1], [0], [0], [1], [0, 0, 1, 1], [], []>} : vector<128x128xbf16>, vector<128x128xbf16>, vector<128x128xf32> -> vector<128x128xf32>
    %c0_163 = arith.constant 0 : index
    %c0_164 = arith.constant 0 : index
    %187 = vector.load %arg7[%c0_163, %c0_164] : memref<1x128xf32, #tpu.memory_space<vmem>>, vector<1x128xf32>
    %188 = vector.broadcast %187 : vector<1x128xf32> to vector<128x128xf32>
    %189 = arith.addf %186, %188 : vector<128x128xf32>
    %c0_165 = arith.constant 0 : index
    %c8_166 = arith.constant 8 : index
    %c0_167 = arith.constant 0 : index
    %c0_168 = arith.constant 0 : index
    %190 = vector.load %arg1[%c0_165, %c8_166, %c0_167, %c0_168] : memref<1x16x16x8xbf16, #tpu.memory_space<vmem>>, vector<1x8x16x8xbf16>
    %191 = vector.shape_cast %190 : vector<1x8x16x8xbf16> to vector<8x16x8xbf16>
    %192 = vector.shape_cast %191 : vector<8x16x8xbf16> to vector<128x8xbf16>
    %c0_169 = arith.constant 0 : index
    %c0_170 = arith.constant 0 : index
    %193 = vector.load %arg8[%c0_169, %c0_170] : memref<8x128xbf16, #tpu.memory_space<vmem>>, vector<8x128xbf16>
    %cst_171 = arith.constant dense<0.000000e+00> : vector<128x128xf32>
    %194 = tpu.matmul %192, %193, %cst_171 {dimension_numbers = #tpu.dot_dimension_numbers<[1], [0], [0], [1], [0, 0, 1, 1], [], []>} : vector<128x8xbf16>, vector<8x128xbf16>, vector<128x128xf32> -> vector<128x128xf32>
    %195 = arith.addf %189, %194 : vector<128x128xf32>
    %196 = vector.shape_cast %195 : vector<128x128xf32> to vector<8x16x128xf32>
    %c0_172 = arith.constant 0 : index
    %c8_173 = arith.constant 8 : index
    %c0_174 = arith.constant 0 : index
    %c0_175 = arith.constant 0 : index
    %197 = vector.load %arg9[%c0_172, %c8_173, %c0_174, %c0_175] : memref<1x16x16x128xf32, #tpu.memory_space<vmem>>, vector<1x8x16x128xf32>
    %198 = vector.shape_cast %197 : vector<1x8x16x128xf32> to vector<8x16x128xf32>
    %199 = vector.shape_cast %196 : vector<8x16x128xf32> to vector<1x8x16x128xf32>
    tpu.vector_store %arg9[%c0_172, %c8_173, %c0_174, %c0_175], %199 {strides = array<i32>} : memref<1x16x16x128xf32, #tpu.memory_space<vmem>>, vector<1x8x16x128xf32>,
    return
  }
  func.func @transform_0(%arg0: i32) -> (i32, i32, i32, i32) {
    %c0_i32 = arith.constant 0 : i32
    %c0_i32_0 = arith.constant 0 : i32
    %c0_i32_1 = arith.constant 0 : i32
    %c0_i32_2 = arith.constant 0 : i32
    return %arg0, %c0_i32, %c0_i32_0, %c0_i32_1 : i32, i32, i32, i32
  }
  func.func @transform_1(%arg0: i32) -> (i32, i32) {
    %c0_i32 = arith.constant 0 : i32
    %c0_i32_0 = arith.constant 0 : i32
    %c0_i32_1 = arith.constant 0 : i32
    return %c0_i32, %c0_i32_0 : i32, i32
  }
  func.func @transform_2(%arg0: i32) -> (i32, i32) {
    %c0_i32 = arith.constant 0 : i32
    %c0_i32_0 = arith.constant 0 : i32
    %c0_i32_1 = arith.constant 0 : i32
    return %c0_i32, %c0_i32_0 : i32, i32
  }
  func.func @transform_3(%arg0: i32) -> (i32, i32, i32) {
    %c0_i32 = arith.constant 0 : i32
    %c0_i32_0 = arith.constant 0 : i32
    %c0_i32_1 = arith.constant 0 : i32
    %c0_i32_2 = arith.constant 0 : i32
    return %c0_i32, %c0_i32_0, %c0_i32_1 : i32, i32, i32
  }
  func.func @transform_4(%arg0: i32) -> (i32, i32) {
    %c0_i32 = arith.constant 0 : i32
    %c0_i32_0 = arith.constant 0 : i32
    %c0_i32_1 = arith.constant 0 : i32
    return %c0_i32, %c0_i32_0 : i32, i32
  }
  func.func @transform_5(%arg0: i32) -> (i32, i32) {
    %c0_i32 = arith.constant 0 : i32
    %c0_i32_0 = arith.constant 0 : i32
    %c0_i32_1 = arith.constant 0 : i32
    return %c0_i32, %c0_i32_0 : i32, i32
  }
  func.func @transform_6(%arg0: i32) -> (i32, i32) {
    %c0_i32 = arith.constant 0 : i32
    %c0_i32_0 = arith.constant 0 : i32
    %c0_i32_1 = arith.constant 0 : i32
    return %c0_i32, %c0_i32_0 : i32, i32
  }
  func.func @transform_7(%arg0: i32) -> (i32, i32) {
    %c0_i32 = arith.constant 0 : i32
    %c0_i32_0 = arith.constant 0 : i32
    %c0_i32_1 = arith.constant 0 : i32
    return %c0_i32, %c0_i32_0 : i32, i32
  }
  func.func @transform_8(%arg0: i32) -> (i32, i32, i32, i32) {
    %c0_i32 = arith.constant 0 : i32
    %c0_i32_0 = arith.constant 0 : i32
    %c0_i32_1 = arith.constant 0 : i32
    %c0_i32_2 = arith.constant 0 : i32
    return %arg0, %c0_i32, %c0_i32_0, %c0_i32_1 : i32, i32, i32, i32
  }
}

</mosaic_0001>

<bundles_post_ra>
// kernel: mbconv_forward.1
= control target key start
LH: loop header
LB: loop body
LE: loop exit
PB: predicated region body
PF: predicated region fallthrough
CT: control target
= control target key end

     0   :  { %s3203_s27 = smov 0   ;;  %s4322_s0 = inlined_call_operand.vmem [shape: bf16[2,16,16,8], index: 0, kind: input, shape index: {}]   ;;  %s4323_s1 = inlined_call_operand.vmem [shape: bf16[8,128], index: 1, kind: input, shape index: {}]   ;;  %s4324_s2 = inlined_call_operand.vmem [shape: f32[1,128], index: 2, kind: input, shape index: {}]   ;;  %s4325_s3 = inlined_call_operand.vmem [shape: f32[3,3,128], index: 3, kind: input, shape index: {}]   ;;  %s4326_s4 = inlined_call_operand.vmem [shape: f32[1,128], index: 4, kind: input, shape index: {}]   ;;  %s4327_s5 = inlined_call_operand.vmem [shape: bf16[128,128], index: 5, kind: input, shape index: {}]   ;;  %s4328_s6 = inlined_call_operand.vmem [shape: f32[1,128], index: 6, kind: input, shape index: {}]   ;;  %s4329_s7 = inlined_call_operand.vmem [shape: bf16[8,128], index: 7, kind: input, shape index: {}]   ;;  %s4330_s8 = inlined_call_operand.vmem [shape: f32[2,16,16,128], index: 8, kind: output, shape index: {}]  }
   0x1 LB: > { %s2632_s28 = sadd.s32 4294967295, %s3155_s27   ;;  %p2636_p0 = scmp.ge.s32.totalorder %s3155_s27, 1  ;;  %s3155_s27 = sphi %s3203_s27, %s18_s27  }
   0x2   : > { %p262_p1 = scmp.lt.s32.totalorder %s3155_s27, 3 }
   0x4   : > { %p263_p2 = pnand %p2636_p0, %p262_p1 }
   0x5   : > { %v365_v0 = vld [vmem:[%s4323_s1] sm:$0xf] (!%p263_p2)  ;;  %vm438_vm0 = vcmask (!%p263_p2), 1043456   ;;  %p296_p3 = scmp.lt.s32.totalorder (!%p263_p2), %s2632_s28, 1  ;;  %vm413_vm1 = vcmask (!%p263_p2), 64512   ;;  %v3157_v20 = vmov (!%p263_p2), 0.0  }
   0x6   : > { %266 = sbr.rel (%p263_p2) target bundleno = 663 (0x297), region = 52  ;;  %3077 = vmatprep.subr.msk.bf16.mxu0 (!%p263_p2), %vm438_vm0, %v365_v0  ;;  %v440_v1 = vsel (!%p263_p2), %vm438_vm0, %v365_v0, 0  ;;  %v588_v2 = vld [vmem:[%s4323_s1] sm:$0xf] (!%p263_p2)  ;;  %307 = vst [vmem:[#allocation2] sm:$0xff] (!%p263_p2), %v3157_v20  ;;  %308 = vst [vmem:[#allocation2 + $0x8] sm:$0xff] (!%p263_p2), %v3157_v20 }
   0x7   : > { %2878 = vmatpush3.bf16.msra.mxu0 (!%p263_p2), %v440_v1  ;;  %3078 = vmatprep.subr.msk.bf16.mxu1 (!%p263_p2), %vm438_vm0, %v588_v2  ;;  %v661_v3 = vsel (!%p263_p2), %vm438_vm0, %v588_v2, 0  ;;  %309 = vst [vmem:[#allocation2 + $0x10] sm:$0xff] (!%p263_p2), %v3157_v20  ;;  %310 = vst [vmem:[#allocation2 + $0x18] sm:$0xff] (!%p263_p2), %v3157_v20  ;;  %v3106_v21 = vld [vmem:[%s4327_s5] sm:$0xff] (!%p263_p2)   ;;  %v3107_v22 = vld [vmem:[%s4327_s5 + $0x8] sm:$0xff] (!%p263_p2)  }
   0x8   : > { %2896 = vmatpush3.bf16.msra.mxu1 (!%p263_p2), %v661_v3  ;;  %317 = vst [vmem:[#allocation2 + $0x27] sm:$0x1] (!%p263_p2), %v3157_v20  ;;  %318 = vst [vmem:[#allocation2 + $0x47] sm:$0x1] (!%p263_p2), %v3157_v20  ;;  %2913 = vmatprep.subr.bf16.mxu0 (!%p263_p2), %v3106_v21  ;;  %v3108_v23 = vld [vmem:[%s4327_s5 + $0x10] sm:$0xff] (!%p263_p2)   ;;  %v3109_v24 = vld [vmem:[%s4327_s5 + $0x18] sm:$0xff] (!%p263_p2)  }
   0x9   : > { %333 = vst [vmem:[#allocation2 + $0x38] sm:$0x1] (!%p263_p2), %v3157_v20  ;;  %334 = vst [vmem:[#allocation2 + $0x58] sm:$0x1] (!%p263_p2), %v3157_v20  ;;  %v3110_v25 = vld [vmem:[%s4327_s5 + $0x20] sm:$0xff] (!%p263_p2)   ;;  %v3111_v26 = vld [vmem:[%s4327_s5 + $0x28] sm:$0xff] (!%p263_p2)  }
   0xa   : > { %312 = vst [vmem:[#allocation2 + $0x220] sm:$0xff] (!%p263_p2), %v3157_v20  ;;  %313 = vst [vmem:[#allocation2 + $0x228] sm:$0xff] (!%p263_p2), %v3157_v20  ;;  %v3112_v27 = vld [vmem:[%s4327_s5] sm:$0xff] (!%p263_p2)   ;;  %v3113_v28 = vld [vmem:[%s4327_s5 + $0x30] sm:$0xff] (!%p263_p2)  }
   0xb   : > { %314 = vst [vmem:[#allocation2 + $0x230] sm:$0xff] (!%p263_p2), %v3157_v20  ;;  %315 = vst [vmem:[#allocation2 + $0x238] sm:$0xff] (!%p263_p2), %v3157_v20  ;;  %2963 = vmatprep.subr.bf16.mxu1 (!%p263_p2), %v3112_v27  ;;  %v3114_v29 = vld [vmem:[%s4327_s5 + $0x8] sm:$0xff] (!%p263_p2)   ;;  %v3115_v30 = vld [vmem:[%s4327_s5 + $0x38] sm:$0xff] (!%p263_p2)  }
   0xc   : > { %319 = vst [vmem:[#allocation2 + $0x67] sm:$0x1] (!%p263_p2), %v3157_v20  ;;  %320 = vst [vmem:[#allocation2 + $0x87] sm:$0x1] (!%p263_p2), %v3157_v20  ;;  %v3116_v31 = vld [vmem:[%s4327_s5 + $0x10] sm:$0xff] (!%p263_p2)   ;;  %v3117_v32 = vld [vmem:[%s4327_s5 + $0x18] sm:$0xff] (!%p263_p2)  }
   0xd   : > { %s4332_s28 = smov (!%p296_p3, %s2632_s28), 1  ;;  %321 = vst [vmem:[#allocation2 + $0xa7] sm:$0x1] %v3157_v20  ;;  %322 = vst [vmem:[#allocation2 + $0xc7] sm:$0x1] %v3157_v20  ;;  %v3118_v33 = vld [vmem:[%s4327_s5 + $0x20] sm:$0xff]  }
   0xe   : > { %s2807_s11 = sshll.u32 %s4332_s28, 7  ;;  %323 = vst [vmem:[#allocation2 + $0xe7] sm:$0x1] %v3157_v20  ;;  %324 = vst [vmem:[#allocation2 + $0x107] sm:$0x1] %v3157_v20  ;;  %v3119_v34 = vld [vmem:[%s4327_s5 + $0x28] sm:$0xff]  }
   0xf   : > { %s3227_s14 = scalar_lea.vmem %s4322_s0, %s2807_s11  ;;  %325 = vst [vmem:[#allocation2 + $0x127] sm:$0x1] %v3157_v20  ;;  %326 = vst [vmem:[#allocation2 + $0x147] sm:$0x1] %v3157_v20  ;;  %v3120_v35 = vld [vmem:[%s4327_s5 + $0x30] sm:$0xff]   ;;  %v3121_v36 = vld [vmem:[%s4327_s5 + $0x38] sm:$0xff]  }
  0x10   : > { %v3090_v4 = vld [vmem:[%s3227_s14] sm:$0xff]   ;;  %v3091_v5 = vld [vmem:[%s3227_s14 + $0x8] sm:$0xff]   ;;  %v3092_v6 = vld [vmem:[%s3227_s14 + $0x10] sm:$0xff]   ;;  %327 = vst [vmem:[#allocation2 + $0x167] sm:$0x1] %v3157_v20  ;;  %s2808_s17 = sshll.u32 %s4332_s28, 8 }
  0x11   : > { %2879 = vmatprep.mubr.msk.bf16.mxu0 %vm413_vm1, %v3090_v4  ;;  %v3094_v7 = vld [vmem:[%s3227_s14 + $0x40] sm:$0xff]   ;;  %v3095_v8 = vld [vmem:[%s3227_s14 + $0x48] sm:$0xff]   ;;  %v3093_v9 = vld [vmem:[%s3227_s14 + $0x18] sm:$0xff]   ;;  %328 = vst [vmem:[#allocation2 + $0x187] sm:$0x1] %v3157_v20  ;;  %s4253_s22 = scalar_lea.vmem %s4330_s8, %s2808_s17 }
  0x12   : > { %2880 = vmatmul.mubr.msk.bf16.vlgmr.msra.gmra.mrb[0].mxu0 %vm413_vm1, %v3091_v5  ;;  %2897 = vmatprep.mubr.msk.bf16.mxu1 %vm413_vm1, %v3094_v7  ;;  %v3096_v10 = vld [vmem:[%s3227_s14 + $0x20] sm:$0xff]   ;;  %v3098_v11 = vld [vmem:[%s3227_s14 + $0x50] sm:$0xff]   ;;  %v3099_v12 = vld [vmem:[%s3227_s14 + $0x58] sm:$0xff]   ;;  %329 = vst [vmem:[#allocation2 + $0x1a7] sm:$0x1] %v3157_v20 }
  0x13   : > { %2883 = vmatprep.mubr.msk.bf16.mxu0 %vm413_vm1, %v3092_v6  ;;  %2898 = vmatmul.mubr.msk.bf16.vlgmr.msra.gmra.mrb[0].mxu1 %vm413_vm1, %v3095_v8  ;;  %v3102_v13 = vld [vmem:[%s3227_s14 + $0x60] sm:$0xff]   ;;  %v3097_v14 = vld [vmem:[%s3227_s14 + $0x28] sm:$0xff]   ;;  %v3100_v15 = vld [vmem:[%s3227_s14 + $0x30] sm:$0xff]   ;;  %330 = vst [vmem:[#allocation2 + $0x1c7] sm:$0x1] %v3157_v20 }
  0x14   : > { %2901 = vmatprep.mubr.msk.bf16.mxu1 %vm413_vm1, %v3098_v11  ;;  %v3103_v16 = vld [vmem:[%s3227_s14 + $0x68] sm:$0xff]   ;;  %v3104_v17 = vld [vmem:[%s3227_s14 + $0x70] sm:$0xff]   ;;  %v3101_v18 = vld [vmem:[%s3227_s14 + $0x38] sm:$0xff]   ;;  %331 = vst [vmem:[#allocation2 + $0x1e7] sm:$0x1] %v3157_v20  ;;  %2914 = vmatpush3.bf16.msra.mxu0 %v3106_v21 }
  0x15   : > { %v3105_v19 = vld [vmem:[%s3227_s14 + $0x78] sm:$0xff]   ;;  %332 = vst [vmem:[#allocation2 + $0x207] sm:$0x1] %v3157_v20  ;;  %335 = vst [vmem:[#allocation2 + $0x78] sm:$0x1] %v3157_v20  ;;  %2915 = vmatprep.subr.bf16.mxu0 %v3107_v22  ;;  %2964 = vmatpush3.bf16.msra.mxu1 %v3112_v27  ;;  %v793_v39 = vld [vmem:[#allocation2 + $0x7] sm:$0xff] }
  0x16   : > { %336 = vst [vmem:[#allocation2 + $0x98] sm:$0x1] %v3157_v20  ;;  %337 = vst [vmem:[#allocation2 + $0xb8] sm:$0x1] %v3157_v20  ;;  %2965 = vmatprep.subr.bf16.mxu1 %v3114_v29  ;;  %v1488_v37 = vld [vmem:[%s4329_s7] sm:$0xf] }
  0x17   : > { %338 = vst [vmem:[#allocation2 + $0xd8] sm:$0x1] %v3157_v20  ;;  %339 = vst [vmem:[#allocation2 + $0xf8] sm:$0x1] %v3157_v20  ;;  %v2379_v38 = vld [vmem:[%s4329_s7] sm:$0xf] }
  0x18   : > { %340 = vst [vmem:[#allocation2 + $0x118] sm:$0x1] %v3157_v20  ;;  %341 = vst [vmem:[#allocation2 + $0x138] sm:$0x1] %v3157_v20  ;;  %2916 = vmatpush3.bf16.msra.mxu0 %v3107_v22  ;;  %v3320_v40 = vld [vmem:[%s4325_s3] ss:$0 sm:$0xff] }
  0x19   : > { %342 = vst [vmem:[#allocation2 + $0x158] sm:$0x1] %v3157_v20  ;;  %343 = vst [vmem:[#allocation2 + $0x178] sm:$0x1] %v3157_v20  ;;  %2917 = vmatprep.subr.bf16.mxu0 %v3108_v23  ;;  %2966 = vmatpush3.bf16.msra.mxu1 %v3114_v29  ;;  %v794_v41 = vld [vmem:[#allocation2 + $0xf] sm:$0xff]  ;;  %v814_v42 = vmul.f32 %v3320_v40, %v793_v39 }
  0x1a   : > { %2884 = vmatmul.mubr.msk.bf16.gmra.mrb[4].mxu0 %vm413_vm1, %v3093_v9  ;;  %344 = vst [vmem:[#allocation2 + $0x198] sm:$0x1] %v3157_v20  ;;  %345 = vst [vmem:[#allocation2 + $0x1b8] sm:$0x1] %v3157_v20  ;;  %2967 = vmatprep.subr.bf16.mxu1 %v3116_v31  ;;  %v815_v43 = vmul.f32 %v3320_v40, %v794_v41  ;;  %v3327_v44 = vld [vmem:[%s4326_s4] ss:$0 sm:$0xff] }
  0x1b   : > { %2887 = vmatprep.mubr.msk.bf16.mxu0 %vm413_vm1, %v3096_v10  ;;  %2902 = vmatmul.mubr.msk.bf16.gmra.mrb[4].mxu1 %vm413_vm1, %v3099_v12  ;;  %346 = vst [vmem:[#allocation2 + $0x1d8] sm:$0x1] %v3157_v20  ;;  %347 = vst [vmem:[#allocation2 + $0x1f8] sm:$0x1] %v3157_v20  ;;  %v3332_v45 = vld [vmem:[%s4325_s3 + $0x1] ss:$0 sm:$0xff]  ;;  %v837_v46 = vadd.f32 %v3327_v44, %v814_v42 }
  0x1c   : > { %2905 = vmatprep.mubr.msk.bf16.mxu1 %vm413_vm1, %v3102_v13  ;;  %348 = vst [vmem:[#allocation2 + $0x218] sm:$0x1] %v3157_v20  ;;  %2918 = vmatpush3.bf16.msra.mxu0 %v3108_v23  ;;  %v874_v47 = vmul.f32 0.0, %v3332_v45  ;;  %v3339_v48 = vld [vmem:[%s4324_s2] ss:$0 sm:$0xff]  ;;  %v838_v49 = vadd.f32 %v3327_v44, %v815_v43  ;;  %v906_v50 = vld [vmem:[#allocation2 + $0x9] sm:$0xff] }
  0x1d   : > { %2919 = vmatprep.subr.bf16.mxu0 %v3109_v24  ;;  %2968 = vmatpush3.bf16.msra.mxu1 %v3116_v31  ;;  %v907_v51 = vld [vmem:[#allocation2 + $0x11] sm:$0xff]  ;;  %v3345_v52 = vld [vmem:[%s4325_s3 + $0x2] ss:$0 sm:$0xff]  ;;  %v3357_v7 = vld [vmem:[%s4325_s3 + $0x5] ss:$0 sm:$0xff] }
  0x1e   : > { %2969 = vmatprep.subr.bf16.mxu1 %v3117_v32  ;;  %v890_v56 = vadd.f32 %v874_v47, %v837_v46  ;;  %v891_v59 = vadd.f32 %v874_v47, %v838_v49  ;;  %v927_v60 = vmul.f32 %v3345_v52, %v906_v50  ;;  %v928_v61 = vmul.f32 %v3345_v52, %v907_v51  ;;  %v3362_v8 = vld [vmem:[%s4325_s3 + $0x9] ss:$0 sm:$0xff]  ;;  %v3424_v49 = vld [vmem:[%s4325_s3 + $0xa] ss:$0 sm:$0xff] }
  0x20   : > { %2920 = vmatpush3.bf16.msra.mxu0 %v3109_v24  ;;  %v3365_v12 = vadd.f32 %v927_v60, %v890_v56  ;;  %v3367_v13 = vadd.f32 %v928_v61, %v891_v59 }
  0x21   : > { %2921 = vmatprep.subr.bf16.mxu0 %v3110_v25  ;;  %2970 = vmatpush3.bf16.msra.mxu1 %v3117_v32  ;;  %v3394_v32 = vld [vmem:[%s4325_s3 + $0x4] ss:$0 sm:$0xff] }
  0x22   : > { %2888 = vmatmul.mubr.msk.bf16.gmra.mrb[8].mxu0 %vm413_vm1, %v3097_v14  ;;  %2971 = vmatprep.subr.bf16.mxu1 %v3118_v33 }
  0x23   : > { %2891 = vmatprep.mubr.msk.bf16.mxu0 %vm413_vm1, %v3100_v15  ;;  %2906 = vmatmul.mubr.msk.bf16.gmra.mrb[8].mxu1 %vm413_vm1, %v3103_v16 }
  0x24   : > { %2909 = vmatprep.mubr.msk.bf16.mxu1 %vm413_vm1, %v3104_v17  ;;  %2922 = vmatpush3.bf16.msra.mxu0 %v3110_v25  ;;  %v3371_v17 = vsel %vm438_vm0, %v1488_v37, 0 }
  0x25   : > { %2923 = vmatprep.subr.bf16.mxu0 %v3111_v26  ;;  %2972 = vmatpush3.bf16.msra.mxu1 %v3118_v33  ;;  %v3399_v33 = vld [vmem:[%s4325_s3 + $0x8] ss:$0 sm:$0xff] }
  0x26   : > { %2973 = vmatprep.subr.bf16.mxu1 %v3119_v34 }
  0x28   : > { %2924 = vmatpush3.bf16.msra.mxu0 %v3111_v26 }
  0x29   : > { %2925 = vmatprep.subr.bf16.mxu0 %v3113_v28  ;;  %2974 = vmatpush3.bf16.msra.mxu1 %v3119_v34 }
  0x2a   : > { %2892 = vmatmul.mubr.msk.bf16.gmra.mrb[12].mxu0 %vm413_vm1, %v3101_v18  ;;  %2975 = vmatprep.subr.bf16.mxu1 %v3120_v35  ;;  %v3374_v18 = vsel %vm438_vm0, %v2379_v38, 0 }
  0x2b   : > { %2910 = vmatmul.mubr.msk.bf16.gmra.mrb[12].mxu1 %vm413_vm1, %v3105_v19 }
  0x2c   : > { %2926 = vmatpush3.bf16.msra.mxu0 %v3113_v28 }
  0x2d   : > { %2927 = vmatprep.subr.bf16.mxu0 %v3115_v30  ;;  %2976 = vmatpush3.bf16.msra.mxu1 %v3120_v35 }
  0x2e   : > { %2977 = vmatprep.subr.bf16.mxu1 %v3121_v36 }
  0x30   : > { %2928 = vmatpush3.bf16.msra.mxu0 %v3115_v30 }
  0x31   : > { %3079 = vmatprep.subr.msk.bf16.mxu0 %vm438_vm0, %v1488_v37  ;;  %2978 = vmatpush3.bf16.msra.mxu1 %v3121_v36 }
  0x32   : > { %3080 = vmatprep.subr.msk.bf16.mxu1 %vm438_vm0, %v2379_v38 }
  0xe5   : > { %v2881_v53 = vpop.f32.mrb[0].mxu0 }
  0xe6   : > { %v485_v54 = vadd.f32 %v2881_v53, %v3339_v48  ;;  %v476_v55 = vpop.f32.mrb[1].mxu0  ;;  %v2899_v3 = vpop.f32.mrb[0].mxu1 }
  0xe7   : > { %v477_v57 = vadd.f32 %v3339_v48, %v476_v55  ;;  %v2882_v58 = vpop.f32.mrb[2].mxu0  ;;  %v706_v5 = vadd.f32 %v2899_v3, %v3339_v48  ;;  %v697_v6 = vpop.f32.mrb[1].mxu1 }
  0xe8   : > { %v541_v62 = vmax.f32 %v485_v54, 0.0  ;;  %v488_v63 = vadd.f32 %v2882_v58, %v3339_v48  ;;  %v479_v0 = vpop.f32.mrb[3].mxu0  ;;  %v698_v10 = vadd.f32 %v3339_v48, %v697_v6  ;;  %v2900_v11 = vpop.f32.mrb[2].mxu1 }
  0xe9   : > { %v539_v1 = vmax.f32 %v477_v57, 0.0  ;;  %v480_v2 = vadd.f32 %v3339_v48, %v479_v0  ;;  %v762_v14 = vmax.f32 %v706_v5, 0.0  ;;  %v709_v15 = vadd.f32 %v2900_v11, %v3339_v48  ;;  %v700_v16 = vpop.f32.mrb[3].mxu1 }
  0xea   : > { %557 = vst [vmem:[#allocation2 + $0x48] sm:$0xff] %v541_v62  ;;  %v542_v4 = vmax.f32 %v488_v63, 0.0  ;;  %v760_v20 = vmax.f32 %v698_v10, 0.0  ;;  %v701_v21 = vadd.f32 %v3339_v48, %v700_v16  ;;  %v3378_v22 = vmul.f32 %v3362_v8, %v541_v62  ;;  %v3450_v63 = vld [vmem:[%s4325_s3 + $0x6] ss:$0 sm:$0xff] }
  0xeb   : > { %555 = vst [vmem:[#allocation2 + $0x28] sm:$0xff] %v539_v1  ;;  %v540_v9 = vmax.f32 %v480_v2, 0.0  ;;  %v3381_v23 = vmul.f32 %v3357_v7, %v541_v62  ;;  %779 = vst [vmem:[#allocation2 + $0x148] sm:$0xff] %v762_v14  ;;  %v763_v26 = vmax.f32 %v709_v15, 0.0  ;;  %v3385_v27 = vmul.f32 %v3357_v7, %v539_v1 }
  0xec   : > { %558 = vst [vmem:[#allocation2 + $0x50] sm:$0xff] %v542_v4  ;;  %v3388_v28 = vmul.f32 %v3332_v45, %v539_v1  ;;  %777 = vst [vmem:[#allocation2 + $0x128] sm:$0xff] %v760_v20  ;;  %v761_v31 = vmax.f32 %v701_v21, 0.0  ;;  %v3402_v34 = vmul.f32 %v3362_v8, %v542_v4  ;;  %v3405_v35 = vmul.f32 %v3357_v7, %v542_v4 }
  0xed   : > { %556 = vst [vmem:[#allocation2 + $0x30] sm:$0xff] %v540_v9  ;;  %v2885_v19 = vpop.f32.mrb[4].mxu0  ;;  %780 = vst [vmem:[#allocation2 + $0x150] sm:$0xff] %v763_v26  ;;  %v3411_v39 = vmul.f32 %v3357_v7, %v540_v9  ;;  %v3414_v41 = vmul.f32 %v3332_v45, %v540_v9  ;;  %v3427_v50 = vmul.f32 %v3332_v45, %v541_v62 }
  0xee   : > { %v501_v24 = vadd.f32 %v2885_v19, %v3339_v48  ;;  %v492_v25 = vpop.f32.mrb[5].mxu0  ;;  %778 = vst [vmem:[#allocation2 + $0x130] sm:$0xff] %v761_v31  ;;  %v2903_v46 = vpop.f32.mrb[4].mxu1  ;;  %v3430_v51 = vmul.f32 %v3332_v45, %v542_v4 }
  0xef   : > { %v493_v29 = vadd.f32 %v3339_v48, %v492_v25  ;;  %v2886_v30 = vpop.f32.mrb[6].mxu0  ;;  %v722_v54 = vadd.f32 %v2903_v46, %v3339_v48  ;;  %v713_v55 = vpop.f32.mrb[5].mxu1 }
  0xf0   : > { %v3407_v36 = vmax.f32 %v501_v24, 0.0  ;;  %v504_v37 = vadd.f32 %v2886_v30, %v3339_v48  ;;  %v495_v38 = vpop.f32.mrb[7].mxu0  ;;  %v714_v60 = vadd.f32 %v3339_v48, %v713_v55  ;;  %v2904_v61 = vpop.f32.mrb[6].mxu1 }
  0xf1   : > { %v3416_v42 = vmax.f32 %v493_v29, 0.0  ;;  %v496_v43 = vadd.f32 %v3339_v48, %v495_v38  ;;  %v3419_v47 = vld [vmem:[#allocation2 + $0x47] sm:$0xff]  ;;  %v766_v3 = vmax.f32 %v722_v54, 0.0  ;;  %v725_v4 = vadd.f32 %v2904_v61, %v3339_v48  ;;  %v716_v5 = vpop.f32.mrb[7].mxu1 }
  0xf2   : > { %561 = vst [vmem:[#allocation2 + $0x88] sm:$0xff] %v3407_v36  ;;  %v3433_v53 = vmax.f32 %v504_v37, 0.0  ;;  %v959_v56 = vld [vmem:[#allocation2 + $0x27] sm:$0xff]  ;;  %v1142_v57 = vmul.f32 %v3399_v33, %v3419_v47  ;;  %v3440_v58 = vmul.f32 %v3394_v32, %v3419_v47  ;;  %v764_v16 = vmax.f32 %v714_v60, 0.0 }
  0xf3   : > { %559 = vst [vmem:[#allocation2 + $0x68] sm:$0xff] %v3416_v42  ;;  %v3443_v59 = vmax.f32 %v496_v43, 0.0  ;;  %v981_v62 = vmul.f32 %v3394_v32, %v959_v56  ;;  %v3452_v0 = vld [vmem:[#allocation2 + $0x4f] sm:$0xff]  ;;  %v816_v2 = vmul.f32 %v3320_v40, %v959_v56  ;;  %v717_v19 = vadd.f32 %v3339_v48, %v716_v5  ;;  %783 = vst [vmem:[#allocation2 + $0x188] sm:$0xff] %v766_v3 }
  0xf4   : > { %v3454_v1 = vld [vmem:[#allocation2 + $0x49] sm:$0xff]  ;;  %562 = vst [vmem:[#allocation2 + $0x90] sm:$0xff] %v3433_v53  ;;  %v3461_v10 = vld [vmem:[#allocation2 + $0x31] sm:$0xff]  ;;  %v1143_v11 = vmul.f32 %v3399_v33, %v3452_v0  ;;  %v767_v29 = vmax.f32 %v725_v4, 0.0  ;;  %781 = vst [vmem:[#allocation2 + $0x168] sm:$0xff] %v764_v16 }
  0xf5   : > { %v960_v6 = vld [vmem:[#allocation2 + $0x2f] sm:$0xff]  ;;  %v3467_v14 = vmul.f32 %v3424_v49, %v3454_v1  ;;  %560 = vst [vmem:[#allocation2 + $0x70] sm:$0xff] %v3443_v59  ;;  %v2889_v15 = vpop.f32.mrb[8].mxu0  ;;  %v997_v21 = vadd.f32 %v981_v62, %v3365_v12  ;;  %v1088_v31 = vmul.f32 %v3450_v63, %v3461_v10  ;;  %v765_v43 = vmax.f32 %v717_v19, 0.0 }
  0xf6   : > { %v3459_v9 = vld [vmem:[#allocation2 + $0x29] sm:$0xff]  ;;  %v982_v20 = vmul.f32 %v3394_v32, %v960_v6  ;;  %v3473_v24 = vld [vmem:[#allocation2 + $0x51] sm:$0xff]  ;;  %v517_v25 = vadd.f32 %v2889_v15, %v3339_v48  ;;  %v508_v26 = vpop.f32.mrb[9].mxu0  ;;  %784 = vst [vmem:[#allocation2 + $0x190] sm:$0xff] %v767_v29  ;;  %v817_v61 = vmul.f32 %v3320_v40, %v960_v6  ;;  %v2907_v4 = vpop.f32.mrb[8].mxu1  ;;  %v839_v19 = vadd.f32 %v3327_v44, %v816_v2 }
  0xf7   : > { %v1087_v30 = vmul.f32 %v3450_v63, %v3459_v9  ;;  %v509_v37 = vadd.f32 %v3339_v48, %v508_v26  ;;  %v2890_v38 = vpop.f32.mrb[10].mxu0  ;;  %v1050_v46 = vadd.f32 %v3385_v27, %v997_v21  ;;  %v1249_v60 = vmul.f32 %v3424_v49, %v3473_v24  ;;  %782 = vst [vmem:[#allocation2 + $0x170] sm:$0xff] %v765_v43  ;;  %v729_v16 = vpop.f32.mrb[9].mxu1 }
  0xf8   : > { %v998_v12 = vadd.f32 %v982_v20, %v3367_v13  ;;  %v3483_v54 = vmax.f32 %v517_v25, 0.0  ;;  %v520_v55 = vadd.f32 %v2890_v38, %v3339_v48  ;;  %v511_v56 = vpop.f32.mrb[11].mxu0  ;;  %v738_v15 = vadd.f32 %v2907_v4, %v3339_v48  ;;  %v2908_v25 = vpop.f32.mrb[10].mxu1 }
  0xf9   : > { %v3489_v62 = vmax.f32 %v509_v37, 0.0  ;;  %v512_v3 = vadd.f32 %v3339_v48, %v511_v56  ;;  %v1103_v27 = vadd.f32 %v1087_v30, %v1050_v46  ;;  %v840_v6 = vadd.f32 %v3327_v44, %v817_v61  ;;  %v732_v37 = vpop.f32.mrb[11].mxu1 }
  0xfa   : > { %v1051_v13 = vadd.f32 %v3411_v39, %v998_v12  ;;  %565 = vst [vmem:[#allocation2 + $0xc8] sm:$0xff] %v3483_v54  ;;  %v3494_v5 = vmax.f32 %v520_v55, 0.0  ;;  %v730_v21 = vadd.f32 %v3339_v48, %v729_v16  ;;  %v770_v29 = vmax.f32 %v738_v15, 0.0 }
  0xfb   : > { %563 = vst [vmem:[#allocation2 + $0xa8] sm:$0xff] %v3489_v62  ;;  %v3500_v20 = vmax.f32 %v512_v3, 0.0  ;;  %v1158_v26 = vadd.f32 %v1142_v57, %v1103_v27  ;;  %v741_v30 = vadd.f32 %v2908_v25, %v3339_v48  ;;  %v892_v38 = vadd.f32 %v3388_v28, %v839_v19 }
  0xfc   : > { %v1104_v39 = vadd.f32 %v1088_v31, %v1051_v13  ;;  %566 = vst [vmem:[#allocation2 + $0xd0] sm:$0xff] %v3494_v5  ;;  %v893_v2 = vadd.f32 %v3414_v41, %v840_v6  ;;  %v768_v12 = vmax.f32 %v730_v21, 0.0  ;;  %v733_v46 = vadd.f32 %v3339_v48, %v732_v37  ;;  %787 = vst [vmem:[#allocation2 + $0x1c8] sm:$0xff] %v770_v29 }
  0xfd   : > { %564 = vst [vmem:[#allocation2 + $0xb0] sm:$0xff] %v3500_v20  ;;  %v2893_v43 = vpop.f32.mrb[12].mxu0  ;;  %v1211_v31 = vadd.f32 %v3378_v22, %v1158_v26  ;;  %v771_v61 = vmax.f32 %v741_v30, 0.0  ;;  %v929_v3 = vmul.f32 %v3345_v52, %v3459_v9  ;;  %v930_v28 = vmul.f32 %v3345_v52, %v3461_v10 }
  0xfe   : > { %v1159_v55 = vadd.f32 %v1143_v11, %v1104_v39  ;;  %v533_v57 = vadd.f32 %v2893_v43, %v3339_v48  ;;  %v524_v56 = vpop.f32.mrb[13].mxu0  ;;  %785 = vst [vmem:[#allocation2 + $0x1a8] sm:$0xff] %v768_v12  ;;  %v769_v13 = vmax.f32 %v733_v46, 0.0  ;;  %v2911_v39 = vpop.f32.mrb[12].mxu1  ;;  %v984_v29 = vmul.f32 %v3394_v32, %v3452_v0  ;;  %v3534_v12 = vld [vmem:[#allocation2 + $0x67] sm:$0xff] }
  0xff   : > { %v3516_v41 = vadd.f32 %v3339_v48, %v524_v56  ;;  %v2894_v4 = vpop.f32.mrb[14].mxu0  ;;  %v1264_v22 = vadd.f32 %v3467_v14, %v1211_v31  ;;  %788 = vst [vmem:[#allocation2 + $0x1d0] sm:$0xff] %v771_v61  ;;  %v945_v19 = vadd.f32 %v929_v3, %v892_v38  ;;  %v946_v9 = vadd.f32 %v930_v28, %v893_v2  ;;  %v745_v14 = vpop.f32.mrb[13].mxu1  ;;  %v1123_v56 = vld [vmem:[#allocation2 + $0x6f] sm:$0xff] }
 0x100   : > { %v1212_v11 = vadd.f32 %v3402_v34, %v1159_v55  ;;  %v553_v27 = vmax.f32 %v533_v57, 0.0  ;;  %v536_v15 = vadd.f32 %v2894_v4, %v3339_v48  ;;  %v527_v16 = vpop.f32.mrb[15].mxu0  ;;  %786 = vst [vmem:[#allocation2 + $0x1b0] sm:$0xff] %v769_v13  ;;  %v754_v34 = vadd.f32 %v2911_v39, %v3339_v48  ;;  %v2912_v2 = vpop.f32.mrb[14].mxu1  ;;  %v1229_v13 = vld [vmem:[#allocation2 + $0x69] sm:$0xff] }
 0x101   : > { %v551_v6 = vmax.f32 %v3516_v41, 0.0  ;;  %v528_v10 = vadd.f32 %v3339_v48, %v527_v16  ;;  %v1280_v25 = vmax.f32 %v1264_v22, 0.0  ;;  %v999_v30 = vadd.f32 %v3440_v58, %v945_v19  ;;  %v748_v31 = vpop.f32.mrb[15].mxu1 }
 0x102   : > { %v1265_v21 = vadd.f32 %v1249_v60, %v1212_v11  ;;  %569 = vst [vmem:[#allocation2 + $0x108] sm:$0xff] %v553_v27  ;;  %v554_v26 = vmax.f32 %v536_v15, 0.0  ;;  %v746_v60 = vadd.f32 %v3339_v48, %v745_v14  ;;  %v1089_v43 = vmul.f32 %v3450_v63, %v3454_v1  ;;  %v1230_v11 = vld [vmem:[#allocation2 + $0x71] sm:$0xff] }
 0x103   : > { %567 = vst [vmem:[#allocation2 + $0xe8] sm:$0xff] %v551_v6  ;;  %v3529_v37 = vmax.f32 %v528_v10, 0.0  ;;  %v774_v46 = vmax.f32 %v754_v34, 0.0  ;;  %v757_v55 = vadd.f32 %v2912_v2, %v3339_v48  ;;  %v1000_v58 = vadd.f32 %v984_v29, %v946_v9  ;;  %v3563_v2 = vld [vmem:[#allocation2 + $0x87] sm:$0xff] }
 0x104   : > { %v1281_v38 = vmax.f32 %v1265_v21, 0.0  ;;  %570 = vst [vmem:[#allocation2 + $0x110] sm:$0xff] %v554_v26  ;;  %v1052_v57 = vadd.f32 %v3381_v23, %v999_v30  ;;  %v772_v3 = vmax.f32 %v746_v60, 0.0  ;;  %v749_v28 = vadd.f32 %v3339_v48, %v748_v31 }
 0x105   : > { %568 = vst [vmem:[#allocation2 + $0xf0] sm:$0xff] %v3529_v37  ;;  %v1090_v4 = vmul.f32 %v3450_v63, %v3473_v24  ;;  %791 = vst [vmem:[#allocation2 + $0x208] sm:$0xff] %v774_v46  ;;  %v775_v22 = vmax.f32 %v757_v55, 0.0  ;;  %v1053_v27 = vadd.f32 %v3405_v35, %v1000_v58  ;;  %v1144_v23 = vmul.f32 %v3399_v33, %v3534_v12 }
 0x106   : > { %v1296_v61 = vpack.c.bf16 %v1281_v38, %v1280_v25  ;;  %v1105_v15 = vadd.f32 %v1089_v43, %v1052_v57  ;;  %789 = vst [vmem:[#allocation2 + $0x1e8] sm:$0xff] %v772_v3  ;;  %v773_v16 = vmax.f32 %v749_v28, 0.0  ;;  %v1145_v19 = vmul.f32 %v3399_v33, %v1123_v56  ;;  %v3565_v43 = vld [vmem:[#allocation2 + $0x8f] sm:$0xff] }
 0x107   : > { %v1197_v48 = vmul.f32 %v3362_v8, %v3416_v42  ;;  %v1198_v9 = vmul.f32 %v3362_v8, %v3443_v59  ;;  %792 = vst [vmem:[#allocation2 + $0x210] sm:$0xff] %v775_v22  ;;  %v1106_v10 = vadd.f32 %v1090_v4, %v1053_v27  ;;  %v1250_v35 = vmul.f32 %v3424_v49, %v1229_v13  ;;  %v3575_v57 = vld [vmem:[#allocation2 + $0x89] sm:$0xff] }
 0x108   : > { %2929 = vmatprep.mubr.bf16.mxu0 %v1296_v61  ;;  %v1160_v21 = vadd.f32 %v1144_v23, %v1105_v15  ;;  %v1251_v25 = vmul.f32 %v3424_v49, %v1230_v11  ;;  %790 = vst [vmem:[#allocation2 + $0x1f0] sm:$0xff] %v773_v16  ;;  %v818_v39 = vmul.f32 %v3320_v40, %v3419_v47  ;;  %v3577_v61 = vld [vmem:[#allocation2 + $0x91] sm:$0xff] }
 0x109   : > { %v819_v26 = vmul.f32 %v3320_v40, %v3452_v0  ;;  %v931_v34 = vmul.f32 %v3345_v52, %v3454_v1  ;;  %v932_v14 = vmul.f32 %v3345_v52, %v3473_v24  ;;  %v1161_v29 = vadd.f32 %v1145_v19, %v1106_v10 }
 0x10a   : > { %v1213_v30 = vadd.f32 %v1197_v48, %v1160_v21  ;;  %v985_v38 = vmul.f32 %v3394_v32, %v3534_v12  ;;  %v986_v60 = vmul.f32 %v3394_v32, %v1123_v56  ;;  %v841_v47 = vadd.f32 %v3327_v44, %v818_v39 }
 0x10b   : > { %v842_v0 = vadd.f32 %v3327_v44, %v819_v26  ;;  %v1038_v1 = vmul.f32 %v3357_v7, %v3416_v42  ;;  %v1039_v24 = vmul.f32 %v3357_v7, %v3443_v59  ;;  %v1214_v46 = vadd.f32 %v1198_v9, %v1161_v29 }
 0x10c   : > { %v1266_v55 = vadd.f32 %v1250_v35, %v1213_v30  ;;  %v1091_v31 = vmul.f32 %v3450_v63, %v1229_v13  ;;  %v1092_v58 = vmul.f32 %v3450_v63, %v1230_v11  ;;  %v894_v3 = vadd.f32 %v3427_v50, %v841_v47 }
 0x10d   : > { %v895_v28 = vadd.f32 %v3430_v51, %v842_v0  ;;  %v1146_v4 = vmul.f32 %v3399_v33, %v3563_v2  ;;  %v1147_v22 = vmul.f32 %v3399_v33, %v3565_v43  ;;  %v1267_v27 = vadd.f32 %v1251_v25, %v1214_v46 }
 0x10e   : > { %v1282_v15 = vmax.f32 %v1266_v55, 0.0  ;;  %v1199_v23 = vmul.f32 %v3362_v8, %v3407_v36  ;;  %v1200_v16 = vmul.f32 %v3362_v8, %v3433_v53  ;;  %v947_v19 = vadd.f32 %v931_v34, %v894_v3 }
 0x10f   : > { %v948_v48 = vadd.f32 %v932_v14, %v895_v28  ;;  %v1252_v50 = vmul.f32 %v3424_v49, %v3575_v57  ;;  %v1253_v51 = vmul.f32 %v3424_v49, %v3577_v61  ;;  %v1283_v9 = vmax.f32 %v1267_v27, 0.0  ;;  %v3620_v28 = vld [vmem:[#allocation2 + $0xa9] sm:$0xff]  ;;  %v3622_v27 = vld [vmem:[#allocation2 + $0xb1] sm:$0xff] }
 0x110   : > { %v820_v10 = vmul.f32 %v3320_v40, %v3534_v12  ;;  %v821_v21 = vmul.f32 %v3320_v40, %v1123_v56  ;;  %v880_v35 = vmul.f32 %v3332_v45, %v3416_v42  ;;  %v1001_v25 = vadd.f32 %v985_v38, %v947_v19  ;;  %v3608_v38 = vld [vmem:[#allocation2 + $0xa7] sm:$0xff] }
 0x111   : > { %v1002_v39 = vadd.f32 %v986_v60, %v948_v48  ;;  %v881_v26 = vmul.f32 %v3332_v45, %v3443_v59  ;;  %v933_v34 = vmul.f32 %v3345_v52, %v1229_v13  ;;  %v1297_v14 = vpack.c.bf16 %v1283_v9, %v1282_v15  ;;  %v3610_v59 = vld [vmem:[#allocation2 + $0xaf] sm:$0xff] }
 0x112   : > { %v843_v29 = vadd.f32 %v3327_v44, %v820_v10  ;;  %v844_v30 = vadd.f32 %v3327_v44, %v821_v21  ;;  %v934_v47 = vmul.f32 %v3345_v52, %v1230_v11  ;;  %v1054_v12 = vadd.f32 %v1038_v1, %v1001_v25 }
 0x113   : > { %v1055_v0 = vadd.f32 %v1039_v24, %v1002_v39  ;;  %v987_v56 = vmul.f32 %v3394_v32, %v3563_v2  ;;  %v988_v42 = vmul.f32 %v3394_v32, %v3565_v43  ;;  %2930 = vmatmul.mubr.bf16.vlgmr.msra.gmra.mrb[16].mxu0 %v1297_v14  ;;  %v1040_v46 = vmul.f32 %v3357_v7, %v3407_v36 }
 0x114   : > { %v896_v13 = vadd.f32 %v880_v35, %v843_v29  ;;  %v897_v60 = vadd.f32 %v881_v26, %v844_v30  ;;  %v1041_v11 = vmul.f32 %v3357_v7, %v3433_v53  ;;  %v1107_v1 = vadd.f32 %v1091_v31, %v1054_v12  ;;  %2946 = vmatpush3.bf16.msra.mxu0 %v3371_v17 }
 0x115   : > { %v1108_v24 = vadd.f32 %v1092_v58, %v1055_v0  ;;  %v1093_v55 = vmul.f32 %v3450_v63, %v3575_v57  ;;  %v1094_v3 = vmul.f32 %v3450_v63, %v3577_v61  ;;  %v1148_v48 = vmul.f32 %v3399_v33, %v3608_v38 }
 0x116   : > { %v949_v15 = vadd.f32 %v933_v34, %v896_v13  ;;  %v950_v19 = vadd.f32 %v934_v47, %v897_v60  ;;  %v1149_v31 = vmul.f32 %v3399_v33, %v3610_v59  ;;  %v1162_v58 = vadd.f32 %v1146_v4, %v1107_v1  ;;  %v3655_v1 = vld [vmem:[#allocation2 + $0xc7] sm:$0xff] }
 0x117   : > { %v1163_v9 = vadd.f32 %v1147_v22, %v1108_v24  ;;  %v1201_v10 = vmul.f32 %v3362_v8, %v3489_v62  ;;  %v1202_v21 = vmul.f32 %v3362_v8, %v3500_v20  ;;  %v1254_v17 = vmul.f32 %v3424_v49, %v3620_v28 }
 0x118   : > { %v1003_v35 = vadd.f32 %v987_v56, %v949_v15  ;;  %v1004_v25 = vadd.f32 %v988_v42, %v950_v19  ;;  %v1255_v39 = vmul.f32 %v3424_v49, %v3622_v27  ;;  %v1215_v26 = vadd.f32 %v1199_v23, %v1162_v58  ;;  %v3665_v58 = vld [vmem:[#allocation2 + $0xc9] sm:$0xff] }
 0x119   : > { %v1216_v34 = vadd.f32 %v1200_v16, %v1163_v9  ;;  %v822_v4 = vmul.f32 %v3320_v40, %v3563_v2  ;;  %v823_v22 = vmul.f32 %v3320_v40, %v3565_v43  ;;  %v882_v30 = vmul.f32 %v3332_v45, %v3407_v36 }
 0x11a   : > { %v1056_v14 = vadd.f32 %v1040_v46, %v1003_v35  ;;  %v1057_v29 = vadd.f32 %v1041_v11, %v1004_v25  ;;  %v883_v47 = vmul.f32 %v3332_v45, %v3433_v53  ;;  %v1268_v12 = vadd.f32 %v1252_v50, %v1215_v26 }
 0x11b   : > { %v1269_v0 = vadd.f32 %v1253_v51, %v1216_v34  ;;  %v845_v56 = vadd.f32 %v3327_v44, %v822_v4  ;;  %v846_v23 = vadd.f32 %v3327_v44, %v823_v22  ;;  %v935_v2 = vmul.f32 %v3345_v52, %v3575_v57  ;;  %v3671_v34 = vld [vmem:[#allocation2 + $0xd1] sm:$0xff] }
 0x11c   : > { %v1109_v16 = vadd.f32 %v1093_v55, %v1056_v14  ;;  %v1110_v42 = vadd.f32 %v1094_v3, %v1057_v29  ;;  %v936_v43 = vmul.f32 %v3345_v52, %v3577_v61  ;;  %v1284_v13 = vmax.f32 %v1268_v12, 0.0  ;;  %v3659_v3 = vld [vmem:[#allocation2 + $0xcf] sm:$0xff] }
 0x11d   : > { %v1285_v60 = vmax.f32 %v1269_v0, 0.0  ;;  %v898_v36 = vadd.f32 %v882_v30, %v845_v56  ;;  %v899_v46 = vadd.f32 %v883_v47, %v846_v23  ;;  %v989_v50 = vmul.f32 %v3394_v32, %v3608_v38 }
 0x11e   : > { %v1164_v11 = vadd.f32 %v1148_v48, %v1109_v16  ;;  %v1165_v53 = vadd.f32 %v1149_v31, %v1110_v42  ;;  %v990_v51 = vmul.f32 %v3394_v32, %v3610_v59  ;;  %v1042_v61 = vmul.f32 %v3357_v7, %v3489_v62 }
 0x11f   : > { %v1298_v24 = vpack.c.bf16 %v1285_v60, %v1284_v13  ;;  %v951_v55 = vadd.f32 %v935_v2, %v898_v36  ;;  %v952_v57 = vadd.f32 %v936_v43, %v899_v46  ;;  %v1043_v48 = vmul.f32 %v3357_v7, %v3500_v20 }
 0x120   : > { %v1217_v15 = vadd.f32 %v1201_v10, %v1164_v11  ;;  %v1218_v19 = vadd.f32 %v1202_v21, %v1165_v53  ;;  %v1095_v31 = vmul.f32 %v3450_v63, %v3620_v28  ;;  %v1096_v25 = vmul.f32 %v3450_v63, %v3622_v27 }
 0x121   : > { %2933 = vmatprep.mubr.bf16.mxu0 %v1298_v24  ;;  %v1005_v9 = vadd.f32 %v989_v50, %v951_v55  ;;  %v1006_v35 = vadd.f32 %v990_v51, %v952_v57  ;;  %v1150_v26 = vmul.f32 %v3399_v33, %v3655_v1  ;;  %v1151_v4 = vmul.f32 %v3399_v33, %v3659_v3  ;;  %v3705_v50 = vld [vmem:[#allocation2 + $0xef] sm:$0xff] }
 0x122   : > { %v1270_v10 = vadd.f32 %v1254_v17, %v1217_v15  ;;  %v1271_v21 = vadd.f32 %v1255_v39, %v1218_v19  ;;  %v1203_v22 = vmul.f32 %v3362_v8, %v3483_v54  ;;  %v1204_v30 = vmul.f32 %v3362_v8, %v3494_v5  ;;  %v3709_v57 = vld [vmem:[#allocation2 + $0xe9] sm:$0xff] }
 0x123   : > { %v1058_v14 = vadd.f32 %v1042_v61, %v1005_v9  ;;  %v1059_v29 = vadd.f32 %v1043_v48, %v1006_v35  ;;  %v1256_v47 = vmul.f32 %v3424_v49, %v3665_v58  ;;  %v1257_v17 = vmul.f32 %v3424_v49, %v3671_v34  ;;  %v3717_v48 = vld [vmem:[#allocation2 + $0xf1] sm:$0xff] }
 0x124   : > { %v1286_v12 = vmax.f32 %v1270_v10, 0.0  ;;  %v1287_v0 = vmax.f32 %v1271_v21, 0.0  ;;  %v824_v39 = vmul.f32 %v3320_v40, %v3608_v38  ;;  %v825_v16 = vmul.f32 %v3320_v40, %v3610_v59  ;;  %v3697_v59 = vld [vmem:[#allocation2 + $0xe7] sm:$0xff] }
 0x125   : > { %v1111_v56 = vadd.f32 %v1095_v31, %v1058_v14  ;;  %v1112_v23 = vadd.f32 %v1096_v25, %v1059_v29  ;;  %v884_v42 = vmul.f32 %v3332_v45, %v3489_v62  ;;  %v885_v13 = vmul.f32 %v3332_v45, %v3500_v20  ;;  %v865_v25 = vld [vmem:[#allocation2 + $0xc8] sm:$0xff] }
 0x126   : > { %v1299_v2 = vpack.c.bf16 %v1287_v0, %v1286_v12  ;;  %v847_v43 = vadd.f32 %v3327_v44, %v824_v39  ;;  %v937_v60 = vmul.f32 %v3345_v52, %v3620_v28  ;;  %v848_v38 = vadd.f32 %v3327_v44, %v825_v16 }
 0x127   : > { %v1166_v36 = vadd.f32 %v1150_v26, %v1111_v56  ;;  %v1167_v46 = vadd.f32 %v1151_v4, %v1112_v23  ;;  %v938_v11 = vmul.f32 %v3345_v52, %v3622_v27  ;;  %v991_v53 = vmul.f32 %v3394_v32, %v3655_v1 }
 0x128   : > { %2934 = vmatmul.mubr.bf16.gmra.mrb[20].mxu0 %v1299_v2  ;;  %v900_v62 = vadd.f32 %v884_v42, %v847_v43  ;;  %v992_v20 = vmul.f32 %v3394_v32, %v3659_v3  ;;  %v1044_v28 = vmul.f32 %v3357_v7, %v3483_v54  ;;  %v901_v55 = vadd.f32 %v885_v13, %v848_v38 }
 0x129   : > { %v1219_v51 = vadd.f32 %v1203_v22, %v1166_v36  ;;  %v1220_v24 = vadd.f32 %v1204_v30, %v1167_v46  ;;  %v1045_v27 = vmul.f32 %v3357_v7, %v3494_v5  ;;  %v1097_v15 = vmul.f32 %v3450_v63, %v3665_v58  ;;  %v866_v22 = vld [vmem:[#allocation2 + $0xd0] sm:$0xff] }
 0x12a   : > { %v953_v61 = vadd.f32 %v937_v60, %v900_v62  ;;  %v1098_v19 = vmul.f32 %v3450_v63, %v3671_v34  ;;  %v1152_v54 = vmul.f32 %v3399_v33, %v3697_v59  ;;  %v954_v35 = vadd.f32 %v938_v11, %v901_v55  ;;  %v3752_v46 = vld [vmem:[#allocation2 + $0x10f] sm:$0xff] }
 0x12b   : > { %v1272_v31 = vadd.f32 %v1256_v47, %v1219_v51  ;;  %v1273_v9 = vadd.f32 %v1257_v17, %v1220_v24  ;;  %v1153_v5 = vmul.f32 %v3399_v33, %v3705_v50  ;;  %v1205_v10 = vmul.f32 %v3362_v8, %v551_v6  ;;  %v3735_v17 = vld [vmem:[#allocation2 + $0xe8] sm:$0xff] }
 0x12c   : > { %v1007_v26 = vadd.f32 %v991_v53, %v953_v61  ;;  %v1206_v21 = vmul.f32 %v3362_v8, %v3529_v37  ;;  %v1258_v4 = vmul.f32 %v3424_v49, %v3709_v57  ;;  %v1008_v30 = vadd.f32 %v992_v20, %v954_v35  ;;  %v3756_v53 = vld [vmem:[#allocation2 + $0x108] sm:$0xff]  ;;  %v3758_v20 = vld [vmem:[#allocation2 + $0x110] sm:$0xff] }
 0x12d   : > { %v1288_v14 = vmax.f32 %v1272_v31, 0.0  ;;  %v1289_v29 = vmax.f32 %v1273_v9, 0.0  ;;  %v1259_v47 = vmul.f32 %v3424_v49, %v3717_v48  ;;  %v826_v0 = vmul.f32 %v3320_v40, %v3655_v1  ;;  %v3768_v61 = vld [vmem:[#allocation2 + $0x111] sm:$0xff] }
 0x12e   : > { %v1060_v12 = vadd.f32 %v1044_v28, %v1007_v26  ;;  %v827_v41 = vmul.f32 %v3320_v40, %v3659_v3  ;;  %v886_v6 = vmul.f32 %v3332_v45, %v865_v25  ;;  %v1061_v56 = vadd.f32 %v1045_v27, %v1008_v30  ;;  %v3744_v3 = vld [vmem:[#allocation2 + $0x107] sm:$0xff] }
 0x12f   : > { %v1300_v39 = vpack.c.bf16 %v1289_v29, %v1288_v14  ;;  %v887_v23 = vmul.f32 %v3332_v45, %v866_v22  ;;  %v939_v16 = vmul.f32 %v3345_v52, %v3665_v58  ;;  %v849_v2 = vadd.f32 %v3327_v44, %v826_v0  ;;  %v3760_v28 = vld [vmem:[#allocation2 + $0x109] sm:$0xff] }
 0x130   : > { %v1113_v42 = vadd.f32 %v1097_v15, %v1060_v12  ;;  %v850_v43 = vadd.f32 %v3327_v44, %v827_v41  ;;  %v940_v1 = vmul.f32 %v3345_v52, %v3671_v34  ;;  %v1114_v13 = vadd.f32 %v1098_v19, %v1061_v56 }
 0x131   : > { %2937 = vmatprep.mubr.bf16.mxu0 %v1300_v39  ;;  %v993_v60 = vmul.f32 %v3394_v32, %v3697_v59  ;;  %v994_v36 = vmul.f32 %v3394_v32, %v3705_v50  ;;  %v1046_v58 = vmul.f32 %v3357_v7, %v3735_v17  ;;  %v902_v11 = vadd.f32 %v886_v6, %v849_v2 }
 0x132   : > { %v1168_v38 = vadd.f32 %v1152_v54, %v1113_v42  ;;  %v903_v62 = vadd.f32 %v887_v23, %v850_v43  ;;  %v1047_v34 = vmul.f32 %v3357_v7, %v3529_v37  ;;  %v1169_v51 = vadd.f32 %v1153_v5, %v1114_v13  ;;  %v3792_v23 = vld [vmem:[#allocation2 + $0x127] sm:$0xff]  ;;  %v3796_v43 = vld [vmem:[#allocation2 + $0x12f] sm:$0xff] }
 0x133   : > { %v1099_v24 = vmul.f32 %v3450_v63, %v3709_v57  ;;  %v1100_v55 = vmul.f32 %v3450_v63, %v3717_v48  ;;  %v1154_v27 = vmul.f32 %v3399_v33, %v3744_v3  ;;  %v955_v37 = vadd.f32 %v939_v16, %v902_v11  ;;  %v3804_v11 = vld [vmem:[#allocation2 + $0x130] sm:$0xff] }
 0x134   : > { %v1221_v15 = vadd.f32 %v1205_v10, %v1168_v38  ;;  %v956_v19 = vadd.f32 %v940_v1, %v903_v62  ;;  %v1155_v54 = vmul.f32 %v3399_v33, %v3752_v46  ;;  %v1222_v31 = vadd.f32 %v1206_v21, %v1169_v51  ;;  %v3802_v38 = vld [vmem:[#allocation2 + $0x128] sm:$0xff] }
 0x135   : > { %v1207_v9 = vmul.f32 %v3362_v8, %v3756_v53  ;;  %v1208_v35 = vmul.f32 %v3362_v8, %v3758_v20  ;;  %v1260_v5 = vmul.f32 %v3424_v49, %v3760_v28  ;;  %v1009_v26 = vadd.f32 %v993_v60, %v955_v37 }
 0x136   : > { %v1274_v25 = vadd.f32 %v1258_v4, %v1221_v15  ;;  %v1010_v22 = vadd.f32 %v994_v36, %v956_v19  ;;  %v1261_v10 = vmul.f32 %v3424_v49, %v3768_v61  ;;  %v1275_v14 = vadd.f32 %v1259_v47, %v1222_v31  ;;  %v3812_v15 = vld [vmem:[#allocation2 + $0x131] sm:$0xff] }
 0x137   : > { %v1707_v29 = vmul.f32 %v3320_v40, %v3744_v3  ;;  %v1708_v21 = vmul.f32 %v3320_v40, %v3752_v46  ;;  %v1767_v30 = vmul.f32 %v3332_v45, %v3756_v53  ;;  %v1062_v0 = vadd.f32 %v1046_v58, %v1009_v26 }
 0x138   : > { %v1290_v12 = vmax.f32 %v1274_v25, 0.0  ;;  %v1063_v41 = vadd.f32 %v1047_v34, %v1010_v22  ;;  %v1768_v4 = vmul.f32 %v3332_v45, %v3758_v20  ;;  %v1291_v6 = vmax.f32 %v1275_v14, 0.0  ;;  %v3820_v25 = vld [vmem:[#allocation2 + $0x14f] sm:$0xff] }
 0x139   : > { %v1730_v39 = vadd.f32 %v3327_v44, %v1707_v29  ;;  %v1731_v47 = vadd.f32 %v3327_v44, %v1708_v21  ;;  %v1820_v56 = vmul.f32 %v3345_v52, %v3760_v28  ;;  %v1115_v16 = vadd.f32 %v1099_v24, %v1062_v0  ;;  %v3826_v21 = vld [vmem:[#allocation2 + $0x148] sm:$0xff] }
 0x13a   : > { %v1116_v42 = vadd.f32 %v1100_v55, %v1063_v41  ;;  %v1821_v2 = vmul.f32 %v3345_v52, %v3768_v61  ;;  %v1873_v1 = vmul.f32 %v3394_v32, %v3792_v23  ;;  %v1301_v13 = vpack.c.bf16 %v1291_v6, %v1290_v12  ;;  %v3810_v55 = vld [vmem:[#allocation2 + $0x129] sm:$0xff] }
 0x13b   : > { %v1783_v60 = vadd.f32 %v1767_v30, %v1730_v39  ;;  %v1784_v36 = vadd.f32 %v1768_v4, %v1731_v47  ;;  %v1874_v58 = vmul.f32 %v3394_v32, %v3796_v43  ;;  %v1170_v62 = vadd.f32 %v1154_v27, %v1115_v16  ;;  %v3828_v30 = vld [vmem:[#allocation2 + $0x150] sm:$0xff] }
 0x13c   : > { %v1171_v34 = vadd.f32 %v1155_v54, %v1116_v42  ;;  %v1926_v51 = vmul.f32 %v3357_v7, %v3802_v38  ;;  %v1927_v24 = vmul.f32 %v3357_v7, %v3804_v11  ;;  %2938 = vmatmul.mubr.bf16.gmra.mrb[24].mxu0 %v1301_v13  ;;  %v1979_v31 = vmul.f32 %v3450_v63, %v3810_v55  ;;  %v3818_v54 = vld [vmem:[#allocation2 + $0x147] sm:$0xff]  ;;  %v868_v6 = vld [vmem:[#allocation2 + $0xf0] sm:$0xff] }
 0x13d   : > { %v1836_v37 = vadd.f32 %v1820_v56, %v1783_v60  ;;  %v1837_v19 = vadd.f32 %v1821_v2, %v1784_v36  ;;  %v1980_v27 = vmul.f32 %v3450_v63, %v3812_v15  ;;  %v1223_v26 = vadd.f32 %v1207_v9, %v1170_v62  ;;  %v3834_v9 = vld [vmem:[#allocation2 + $0x149] sm:$0xff] }
 0x13e   : > { %v1224_v22 = vadd.f32 %v1208_v35, %v1171_v34  ;;  %v2033_v14 = vmul.f32 %v3399_v33, %v3818_v54  ;;  %v2034_v29 = vmul.f32 %v3399_v33, %v3820_v25  ;;  %v2086_v41 = vmul.f32 %v3362_v8, %v3826_v21  ;;  %v3836_v35 = vld [vmem:[#allocation2 + $0x151] sm:$0xff] }
 0x13f   : > { %v1889_v12 = vadd.f32 %v1873_v1, %v1836_v37  ;;  %v1890_v0 = vadd.f32 %v1874_v58, %v1837_v19  ;;  %v2087_v4 = vmul.f32 %v3362_v8, %v3828_v30  ;;  %v1276_v39 = vadd.f32 %v1260_v5, %v1223_v26 }
 0x140   : > { %v1277_v47 = vadd.f32 %v1261_v10, %v1224_v22  ;;  %v2139_v56 = vmul.f32 %v3424_v49, %v3834_v9  ;;  %v2140_v16 = vmul.f32 %v3424_v49, %v3836_v35  ;;  %v828_v1 = vmul.f32 %v3320_v40, %v3697_v59 }
 0x141   : > { %v1942_v42 = vadd.f32 %v1926_v51, %v1889_v12  ;;  %v1943_v2 = vadd.f32 %v1927_v24, %v1890_v0  ;;  %v829_v13 = vmul.f32 %v3320_v40, %v3705_v50  ;;  %v1292_v60 = vmax.f32 %v1276_v39, 0.0 }
 0x142   : > { %v1293_v36 = vmax.f32 %v1277_v47, 0.0  ;;  %v888_v5 = vmul.f32 %v3332_v45, %v3735_v17  ;;  %v889_v10 = vmul.f32 %v3332_v45, %v868_v6  ;;  %v851_v34 = vadd.f32 %v3327_v44, %v828_v1 }
 0x143   : > { %v1995_v58 = vadd.f32 %v1979_v31, %v1942_v42  ;;  %v1996_v62 = vadd.f32 %v1980_v27, %v1943_v2  ;;  %v852_v51 = vadd.f32 %v3327_v44, %v829_v13  ;;  %v941_v59 = vmul.f32 %v3345_v52, %v3709_v57  ;;  %v3897_v2 = vld [vmem:[%s4325_s3 + $0x1] ss:$0 sm:$0xff] }
 0x144   : > { %v1302_v24 = vpack.c.bf16 %v1293_v36, %v1292_v60  ;;  %v942_v40 = vmul.f32 %v3345_v52, %v3717_v48  ;;  %v995_v50 = vmul.f32 %v3394_v32, %v3744_v3  ;;  %v904_v19 = vadd.f32 %v888_v5, %v851_v34  ;;  %v3906_v36 = vld [vmem:[%s4325_s3 + $0x2] ss:$0 sm:$0xff] }
 0x145   : > { %v2049_v37 = vadd.f32 %v2033_v14, %v1995_v58  ;;  %v2050_v17 = vadd.f32 %v2034_v29, %v1996_v62  ;;  %v905_v45 = vadd.f32 %v889_v10, %v852_v51  ;;  %v996_v31 = vmul.f32 %v3394_v32, %v3752_v46 }
 0x146   : > { %2941 = vmatprep.mubr.bf16.mxu0 %v1302_v24  ;;  %v1048_v44 = vmul.f32 %v3357_v7, %v3756_v53  ;;  %v1049_v57 = vmul.f32 %v3357_v7, %v3758_v20  ;;  %v1101_v52 = vmul.f32 %v3450_v63, %v3760_v28  ;;  %v957_v3 = vadd.f32 %v941_v59, %v904_v19  ;;  %v3920_v24 = vld [vmem:[%s4325_s3 + $0x5] ss:$0 sm:$0xff] }
 0x147   : > { %v2102_v48 = vadd.f32 %v2086_v41, %v2049_v37  ;;  %v2103_v27 = vadd.f32 %v2087_v4, %v2050_v17  ;;  %v958_v26 = vadd.f32 %v942_v40, %v905_v45  ;;  %v1102_v22 = vmul.f32 %v3450_v63, %v3768_v61  ;;  %v3882_v41 = vld [vmem:[%s4325_s3] ss:$0 sm:$0xff]  ;;  %v3928_v37 = vld [vmem:[#allocation2 + $0x167] sm:$0xff]  ;;  %v3932_v45 = vld [vmem:[#allocation2 + $0x16f] sm:$0xff] }
 0x148   : > { %v1156_v14 = vmul.f32 %v3399_v33, %v3792_v23  ;;  %v1157_v46 = vmul.f32 %v3399_v33, %v3796_v43  ;;  %v1209_v53 = vmul.f32 %v3362_v8, %v3802_v38  ;;  %v1011_v29 = vadd.f32 %v995_v50, %v957_v3  ;;  %v3945_v3 = vld [vmem:[%s4325_s3 + $0x9] ss:$0 sm:$0xff] }
 0x149   : > { %v2155_v7 = vadd.f32 %v2139_v56, %v2102_v48  ;;  %v2156_v20 = vadd.f32 %v2140_v16, %v2103_v27  ;;  %v1012_v28 = vadd.f32 %v996_v31, %v958_v26  ;;  %v1210_v12 = vmul.f32 %v3362_v8, %v3804_v11  ;;  %v3891_v16 = vld [vmem:[%s4326_s4] ss:$0 sm:$0xff]  ;;  %v3940_v27 = vld [vmem:[#allocation2 + $0x170] sm:$0xff] }
 0x14a   : > { %v1262_v0 = vmul.f32 %v3424_v49, %v3810_v55  ;;  %v1263_v61 = vmul.f32 %v3424_v49, %v3812_v15  ;;  %v1709_v4 = vmul.f32 %v3882_v41, %v3792_v23  ;;  %v1064_v47 = vadd.f32 %v1048_v44, %v1011_v29  ;;  %v3936_v44 = vld [vmem:[#allocation2 + $0x168] sm:$0xff] }
 0x14b   : > { %v2171_v6 = vmax.f32 %v2155_v7, 0.0  ;;  %v2172_v39 = vmax.f32 %v2156_v20, 0.0  ;;  %v1065_v56 = vadd.f32 %v1049_v57, %v1012_v28  ;;  %v1710_v8 = vmul.f32 %v3882_v41, %v3796_v43  ;;  %v3949_v26 = vld [vmem:[#allocation2 + $0x169] sm:$0xff] }
 0x14c   : > { %v1732_v42 = vadd.f32 %v3891_v16, %v1709_v4  ;;  %v1769_v23 = vmul.f32 %v3897_v2, %v3802_v38  ;;  %v1770_v1 = vmul.f32 %v3897_v2, %v3804_v11  ;;  %v1117_v43 = vadd.f32 %v1101_v52, %v1064_v47 }
 0x14d   : > { %v2187_v13 = vpack.c.bf16 %v2172_v39, %v2171_v6  ;;  %v1118_v60 = vadd.f32 %v1102_v22, %v1065_v56  ;;  %v1822_v5 = vmul.f32 %v3906_v36, %v3810_v55  ;;  %v1733_v10 = vadd.f32 %v3891_v16, %v1710_v8  ;;  %v3122_v8 = vld [vmem:[%s3227_s14] sm:$0xff]  }
 0x14e   : > { %v1785_v58 = vadd.f32 %v1769_v23, %v1732_v42  ;;  %v1823_v38 = vmul.f32 %v3906_v36, %v3812_v15  ;;  %v1875_v11 = vmul.f32 %v3394_v32, %v3818_v54  ;;  %v1172_v62 = vadd.f32 %v1156_v14, %v1117_v43 }
 0x14f   : > { %2979 = vmatprep.mubr.bf16.mxu1 %v2187_v13  ;;  %v1173_v34 = vadd.f32 %v1157_v46, %v1118_v60  ;;  %v1876_v51 = vmul.f32 %v3394_v32, %v3820_v25  ;;  %v1928_v55 = vmul.f32 %v3920_v24, %v3826_v21  ;;  %v1786_v59 = vadd.f32 %v1770_v1, %v1733_v10  ;;  %v3977_v13 = vld [vmem:[%s4325_s3 + $0x4] ss:$0 sm:$0xff] }
 0x150   : > { %v1838_v40 = vadd.f32 %v1822_v5, %v1785_v58  ;;  %v1929_v15 = vmul.f32 %v3920_v24, %v3828_v30  ;;  %v1981_v50 = vmul.f32 %v3450_v63, %v3834_v9  ;;  %v1225_v17 = vadd.f32 %v1209_v53, %v1172_v62  ;;  %v3953_v53 = vld [vmem:[#allocation2 + $0x171] sm:$0xff]  ;;  %v3994_v62 = vld [vmem:[#allocation2 + $0x187] sm:$0xff] }
 0x151   : > { %v1226_v32 = vadd.f32 %v1210_v12, %v1173_v34  ;;  %v1982_v19 = vmul.f32 %v3450_v63, %v3836_v35  ;;  %v2035_v31 = vmul.f32 %v3399_v33, %v3928_v37  ;;  %v1839_v57 = vadd.f32 %v1823_v38, %v1786_v59  ;;  %v3990_v38 = vld [vmem:[%s4325_s3 + $0x6] ss:$0 sm:$0xff]  ;;  %v3996_v34 = vld [vmem:[#allocation2 + $0x18f] sm:$0xff]  ;;  %v4004_v59 = vld [vmem:[%s4325_s3 + $0x8] ss:$0 sm:$0xff] }
 0x152   : > { %v1891_v52 = vadd.f32 %v1875_v11, %v1838_v40  ;;  %v2036_v48 = vmul.f32 %v3399_v33, %v3932_v45  ;;  %v2088_v63 = vmul.f32 %v3945_v3, %v3936_v44  ;;  %v1278_v22 = vadd.f32 %v1262_v0, %v1225_v17 }
 0x153   : > { %v1279_v14 = vadd.f32 %v1263_v61, %v1226_v32  ;;  %v2089_v46 = vmul.f32 %v3945_v3, %v3940_v27  ;;  %v2141_v33 = vmul.f32 %v3424_v49, %v3949_v26  ;;  %v1892_v7 = vadd.f32 %v1876_v51, %v1839_v57 }
 0x154   : > { %v1944_v20 = vadd.f32 %v1928_v55, %v1891_v52  ;;  %v2142_v29 = vmul.f32 %v3424_v49, %v3953_v53  ;;  %v1711_v28 = vmul.f32 %v3882_v41, %v3818_v54  ;;  %v1294_v12 = vmax.f32 %v1278_v22, 0.0  ;;  %v4016_v52 = vld [vmem:[#allocation2 + $0x189] sm:$0xff] }
 0x155   : > { %v1295_v0 = vmax.f32 %v1279_v14, 0.0  ;;  %v1712_v61 = vmul.f32 %v3882_v41, %v3820_v25  ;;  %v1771_v4 = vmul.f32 %v3897_v2, %v3826_v21  ;;  %v1945_v6 = vadd.f32 %v1929_v15, %v1892_v7  ;;  %v4025_v14 = vld [vmem:[%s4325_s3 + $0xa] ss:$0 sm:$0xff] }
 0x156   : > { %v1997_v39 = vadd.f32 %v1981_v50, %v1944_v20  ;;  %v1734_v47 = vadd.f32 %v3891_v16, %v1711_v28  ;;  %v1772_v56 = vmul.f32 %v3897_v2, %v3828_v30  ;;  %v1824_v54 = vmul.f32 %v3906_v36, %v3834_v9  ;;  %v4010_v50 = vld [vmem:[#allocation2 + $0x188] sm:$0xff] }
 0x157   : > { %v1303_v49 = vpack.c.bf16 %v1295_v0, %v1294_v12  ;;  %v1735_v42 = vadd.f32 %v3891_v16, %v1712_v61  ;;  %v1825_v25 = vmul.f32 %v3906_v36, %v3836_v35  ;;  %v1998_v23 = vadd.f32 %v1982_v19, %v1945_v6  ;;  %v3123_v7 = vld [vmem:[%s3227_s14 + $0x8] sm:$0xff]   ;;  %v3124_v61 = vld [vmem:[%s3227_s14 + $0x10] sm:$0xff]  }
 0x158   : > { %v2051_v1 = vadd.f32 %v2035_v31, %v1997_v39  ;;  %v1787_v21 = vadd.f32 %v1771_v4, %v1734_v47  ;;  %v1877_v30 = vmul.f32 %v3977_v13, %v3928_v37  ;;  %v1878_v60 = vmul.f32 %v3977_v13, %v3932_v45  ;;  %v4012_v31 = vld [vmem:[#allocation2 + $0x190] sm:$0xff] }
 0x159   : > { %2942 = vmatmul.mubr.bf16.gmra.mrb[28].mxu0 %v1303_v49  ;;  %v1788_v43 = vadd.f32 %v1772_v56, %v1735_v42  ;;  %v1930_v9 = vmul.f32 %v3920_v24, %v3936_v44  ;;  %v1931_v35 = vmul.f32 %v3920_v24, %v3940_v27  ;;  %v2052_v5 = vadd.f32 %v2036_v48, %v1998_v23  ;;  %v4018_v48 = vld [vmem:[#allocation2 + $0x191] sm:$0xff] }
 0x15a   : > { %v2104_v10 = vadd.f32 %v2088_v63, %v2051_v1  ;;  %v1840_v58 = vadd.f32 %v1824_v54, %v1787_v21  ;;  %v1983_v11 = vmul.f32 %v3990_v38, %v3949_v26  ;;  %2947 = vmatprep.mubr.msk.bf16.mxu0 %vm413_vm1, %v3122_v8  ;;  %v1984_v55 = vmul.f32 %v3990_v38, %v3953_v53 }
 0x15b   : > { %v1841_v51 = vadd.f32 %v1825_v25, %v1788_v43  ;;  %v2037_v40 = vmul.f32 %v4004_v59, %v3994_v62  ;;  %v2038_v15 = vmul.f32 %v4004_v59, %v3996_v34  ;;  %v2105_v17 = vadd.f32 %v2089_v46, %v2052_v5  ;;  %v4063_v5 = vld [vmem:[#allocation2 + $0x1af] sm:$0xff] }
 0x15c   : > { %v2157_v32 = vadd.f32 %v2141_v33, %v2104_v10  ;;  %v1893_v19 = vadd.f32 %v1877_v30, %v1840_v58  ;;  %v2090_v57 = vmul.f32 %v3945_v3, %v4010_v50  ;;  %v2091_v22 = vmul.f32 %v3945_v3, %v4012_v31 }
 0x15d   : > { %v1894_v63 = vadd.f32 %v1878_v60, %v1841_v51  ;;  %v2143_v46 = vmul.f32 %v4025_v14, %v4016_v52  ;;  %v2144_v33 = vmul.f32 %v4025_v14, %v4018_v48  ;;  %v2158_v20 = vadd.f32 %v2142_v29, %v2105_v17 }
 0x15e   : > { %v2173_v28 = vmax.f32 %v2157_v32, 0.0  ;;  %v1946_v12 = vadd.f32 %v1930_v9, %v1893_v19  ;;  %v1713_v0 = vmul.f32 %v3882_v41, %v3928_v37  ;;  %v1714_v6 = vmul.f32 %v3882_v41, %v3932_v45 }
 0x15f   : > { %v1947_v4 = vadd.f32 %v1931_v35, %v1894_v63  ;;  %v1773_v39 = vmul.f32 %v3897_v2, %v3936_v44  ;;  %v1774_v47 = vmul.f32 %v3897_v2, %v3940_v27  ;;  %v2174_v56 = vmax.f32 %v2158_v20, 0.0  ;;  %v4061_v35 = vld [vmem:[#allocation2 + $0x1a7] sm:$0xff]  ;;  %v4081_v63 = vld [vmem:[#allocation2 + $0x1b1] sm:$0xff] }
 0x160   : > { %v1999_v8 = vadd.f32 %v1983_v11, %v1946_v12  ;;  %v1736_v29 = vadd.f32 %v3891_v16, %v1713_v0  ;;  %v1826_v49 = vmul.f32 %v3906_v36, %v3949_v26  ;;  %v1737_v37 = vadd.f32 %v3891_v16, %v1714_v6 }
 0x161   : > { %v2000_v42 = vadd.f32 %v1984_v55, %v1947_v4  ;;  %2948 = vmatmul.mubr.msk.bf16.vlgmr.msra.gmra.mrb[16].mxu0 %vm413_vm1, %v3123_v7  ;;  %v1827_v45 = vmul.f32 %v3906_v36, %v3953_v53  ;;  %v1879_v44 = vmul.f32 %v3977_v13, %v3994_v62  ;;  %v2188_v54 = vpack.c.bf16 %v2174_v56, %v2173_v28  ;;  %v4070_v55 = vld [vmem:[#allocation2 + $0x1a8] sm:$0xff] }
 0x162   : > { %v2053_v27 = vadd.f32 %v2037_v40, %v1999_v8  ;;  %v1789_v25 = vadd.f32 %v1773_v39, %v1736_v29  ;;  %v1880_v23 = vmul.f32 %v3977_v13, %v3996_v34  ;;  %2951 = vmatprep.mubr.msk.bf16.mxu0 %vm413_vm1, %v3124_v61  ;;  %v1790_v1 = vadd.f32 %v1774_v47, %v1737_v37  ;;  %v4072_v40 = vld [vmem:[#allocation2 + $0x1b0] sm:$0xff] }
 0x163   : > { %v2054_v26 = vadd.f32 %v2038_v15, %v2000_v42  ;;  %v1932_v21 = vmul.f32 %v3920_v24, %v4010_v50  ;;  %v1933_v53 = vmul.f32 %v3920_v24, %v4012_v31  ;;  %2980 = vmatmul.mubr.bf16.vlgmr.msra.gmra.mrb[16].mxu1 %v2188_v54  ;;  %v1985_v60 = vmul.f32 %v3990_v38, %v4016_v52  ;;  %v3125_v15 = vld [vmem:[%s3227_s14 + $0x18] sm:$0xff]  }
 0x164   : > { %v2106_v30 = vadd.f32 %v2090_v57, %v2053_v27  ;;  %v1842_v43 = vadd.f32 %v1826_v49, %v1789_v25  ;;  %v1986_v9 = vmul.f32 %v3990_v38, %v4018_v48  ;;  %2996 = vmatpush3.bf16.msra.mxu1 %v3374_v18  ;;  %v1843_v58 = vadd.f32 %v1827_v45, %v1790_v1  ;;  %v4079_v57 = vld [vmem:[#allocation2 + $0x1a9] sm:$0xff] }
 0x165   : > { %v2107_v10 = vadd.f32 %v2091_v22, %v2054_v26  ;;  %v2039_v11 = vmul.f32 %v4004_v59, %v4061_v35  ;;  %v2040_v51 = vmul.f32 %v4004_v59, %v4063_v5  ;;  %v2092_v19 = vmul.f32 %v3945_v3, %v4070_v55  ;;  %v3126_v22 = vld [vmem:[%s3227_s14 + $0x20] sm:$0xff]  }
 0x166   : > { %v2159_v17 = vadd.f32 %v2143_v46, %v2106_v30  ;;  %v1895_v32 = vadd.f32 %v1879_v44, %v1842_v43  ;;  %v2093_v18 = vmul.f32 %v3945_v3, %v4072_v40  ;;  %v1896_v20 = vadd.f32 %v1880_v23, %v1843_v58  ;;  %v4114_v25 = vld [vmem:[#allocation2 + $0x1c7] sm:$0xff]  ;;  %v4119_v30 = vld [vmem:[#allocation2 + $0x1cf] sm:$0xff] }
 0x167   : > { %v2160_v7 = vadd.f32 %v2144_v33, %v2107_v10  ;;  %v2145_v28 = vmul.f32 %v4025_v14, %v4079_v57  ;;  %v2146_v46 = vmul.f32 %v4025_v14, %v4081_v63  ;;  %v1715_v61 = vmul.f32 %v3882_v41, %v3994_v62  ;;  %v3127_v23 = vld [vmem:[%s3227_s14 + $0x28] sm:$0xff]  }
 0x168   : > { %v2175_v12 = vmax.f32 %v2159_v17, 0.0  ;;  %v1948_v0 = vadd.f32 %v1932_v21, %v1895_v32  ;;  %v1716_v4 = vmul.f32 %v3882_v41, %v3996_v34  ;;  %v1949_v39 = vadd.f32 %v1933_v53, %v1896_v20  ;;  %v4121_v43 = vld [vmem:[#allocation2 + $0x1c8] sm:$0xff] }
 0x169   : > { %v2176_v6 = vmax.f32 %v2160_v7, 0.0  ;;  %v1775_v33 = vmul.f32 %v3897_v2, %v4010_v50  ;;  %v1776_v47 = vmul.f32 %v3897_v2, %v4012_v31  ;;  %2952 = vmatmul.mubr.msk.bf16.gmra.mrb[20].mxu0 %vm413_vm1, %v3125_v15  ;;  %v1738_v8 = vadd.f32 %v3891_v16, %v1715_v61 }
 0x16a   : > { %v2001_v56 = vadd.f32 %v1985_v60, %v1948_v0  ;;  %v1739_v29 = vadd.f32 %v3891_v16, %v1716_v4  ;;  %v1828_v62 = vmul.f32 %v3906_v36, %v4016_v52  ;;  %2955 = vmatprep.mubr.msk.bf16.mxu0 %vm413_vm1, %v3126_v22  ;;  %v2002_v49 = vadd.f32 %v1986_v9, %v1949_v39  ;;  %v3128_v60 = vld [vmem:[%s3227_s14 + $0x30] sm:$0xff]  }
 0x16b   : > { %v2189_v34 = vpack.c.bf16 %v2176_v6, %v2175_v12  ;;  %v1829_v50 = vmul.f32 %v3906_v36, %v4018_v48  ;;  %v1881_v31 = vmul.f32 %v3977_v13, %v4061_v35  ;;  %v1791_v37 = vadd.f32 %v1775_v33, %v1738_v8  ;;  %v4134_v22 = vld [vmem:[#allocation2 + $0x1c9] sm:$0xff] }
 0x16c   : > { %v2055_v42 = vadd.f32 %v2039_v11, %v2001_v56  ;;  %v1792_v45 = vadd.f32 %v1776_v47, %v1739_v29  ;;  %v1882_v44 = vmul.f32 %v3977_v13, %v4063_v5  ;;  %v2056_v52 = vadd.f32 %v2040_v51, %v2002_v49  ;;  %v4128_v11 = vld [vmem:[#allocation2 + $0x1d0] sm:$0xff] }
 0x16d   : > { %2983 = vmatprep.mubr.bf16.mxu1 %v2189_v34  ;;  %v1934_v54 = vmul.f32 %v3920_v24, %v4070_v55  ;;  %v1935_v27 = vmul.f32 %v3920_v24, %v4072_v40  ;;  %v1987_v48 = vmul.f32 %v3990_v38, %v4079_v57  ;;  %v1844_v1 = vadd.f32 %v1828_v62, %v1791_v37 }
 0x16e   : > { %v2108_v26 = vadd.f32 %v2092_v19, %v2055_v42  ;;  %v1845_v21 = vadd.f32 %v1829_v50, %v1792_v45  ;;  %v1988_v53 = vmul.f32 %v3990_v38, %v4081_v63  ;;  %v2109_v9 = vadd.f32 %v2093_v18, %v2056_v52  ;;  %v4136_v18 = vld [vmem:[#allocation2 + $0x1d1] sm:$0xff] }
 0x16f   : > { %v2041_v10 = vmul.f32 %v4004_v59, %v4114_v25  ;;  %v2042_v58 = vmul.f32 %v4004_v59, %v4119_v30  ;;  %v2094_v51 = vmul.f32 %v3945_v3, %v4121_v43  ;;  %v1897_v17 = vadd.f32 %v1881_v31, %v1844_v1  ;;  %v3130_v50 = vld [vmem:[%s3227_s14 + $0x38] sm:$0xff]  }
 0x170   : > { %v2161_v15 = vadd.f32 %v2145_v28, %v2108_v26  ;;  %v1898_v32 = vadd.f32 %v1882_v44, %v1845_v21  ;;  %v2095_v19 = vmul.f32 %v3945_v3, %v4128_v11  ;;  %v2162_v7 = vadd.f32 %v2146_v46, %v2109_v9 }
 0x171   : > { %v2147_v20 = vmul.f32 %v4025_v14, %v4134_v22  ;;  %v2148_v12 = vmul.f32 %v4025_v14, %v4136_v18  ;;  %v1717_v0 = vmul.f32 %v3882_v41, %v4061_v35  ;;  %2956 = vmatmul.mubr.msk.bf16.gmra.mrb[24].mxu0 %vm413_vm1, %v3127_v23  ;;  %v1950_v61 = vadd.f32 %v1934_v54, %v1897_v17 }
 0x172   : > { %v2177_v28 = vmax.f32 %v2161_v15, 0.0  ;;  %v1951_v4 = vadd.f32 %v1935_v27, %v1898_v32  ;;  %v1718_v6 = vmul.f32 %v3882_v41, %v4063_v5  ;;  %2959 = vmatprep.mubr.msk.bf16.mxu0 %vm413_vm1, %v3128_v60  ;;  %v2178_v46 = vmax.f32 %v2162_v7, 0.0  ;;  %v2022_v27 = vld [vmem:[#allocation2 + $0x1e7] sm:$0xff] }
 0x173   : > { %v1740_v39 = vadd.f32 %v3891_v16, %v1717_v0  ;;  %v1777_v33 = vmul.f32 %v3897_v2, %v4070_v55  ;;  %v1778_v35 = vmul.f32 %v3897_v2, %v4072_v40  ;;  %v2003_v47 = vadd.f32 %v1987_v48, %v1950_v61  ;;  %v4169_v48 = vld [vmem:[#allocation2 + $0x1ef] sm:$0xff] }
 0x174   : > { %v2004_v56 = vadd.f32 %v1988_v53, %v1951_v4  ;;  %v1741_v8 = vadd.f32 %v3891_v16, %v1718_v6  ;;  %v1830_v29 = vmul.f32 %v3906_v36, %v4079_v57  ;;  %v2190_v62 = vpack.c.bf16 %v2178_v46, %v2177_v28  ;;  %v2075_v53 = vld [vmem:[#allocation2 + $0x1e8] sm:$0xff] }
 0x175   : > { %v1793_v5 = vadd.f32 %v1777_v33, %v1740_v39  ;;  %v1831_v34 = vmul.f32 %v3906_v36, %v4081_v63  ;;  %v1883_v49 = vmul.f32 %v3977_v13, %v4114_v25  ;;  %v2057_v55 = vadd.f32 %v2041_v10, %v2003_v47  ;;  %v2128_v15 = vld [vmem:[#allocation2 + $0x1e9] sm:$0xff] }
 0x176   : > { %v2058_v31 = vadd.f32 %v2042_v58, %v2004_v56  ;;  %v1794_v42 = vadd.f32 %v1778_v35, %v1741_v8  ;;  %v1884_v40 = vmul.f32 %v3977_v13, %v4119_v30  ;;  %2984 = vmatmul.mubr.bf16.gmra.mrb[20].mxu1 %v2190_v62  ;;  %v1936_v57 = vmul.f32 %v3920_v24, %v4121_v43  ;;  %v2076_v58 = vld [vmem:[#allocation2 + $0x1f0] sm:$0xff] }
 0x177   : > { %v1846_v37 = vadd.f32 %v1830_v29, %v1793_v5  ;;  %v1937_v45 = vmul.f32 %v3920_v24, %v4128_v11  ;;  %v2110_v44 = vadd.f32 %v2094_v51, %v2057_v55  ;;  %v1989_v54 = vmul.f32 %v3990_v38, %v4134_v22  ;;  %v2129_v56 = vld [vmem:[#allocation2 + $0x1f1] sm:$0xff] }
 0x178   : > { %v2111_v63 = vadd.f32 %v2095_v19, %v2058_v31  ;;  %v1847_v52 = vadd.f32 %v1831_v34, %v1794_v42  ;;  %v1990_v26 = vmul.f32 %v3990_v38, %v4136_v18  ;;  %v2043_v1 = vmul.f32 %v4004_v59, %v2022_v27  ;;  %v2024_v34 = vld [vmem:[#allocation2 + $0x207] sm:$0xff]  ;;  %v2025_v55 = vld [vmem:[#allocation2 + $0x20f] sm:$0xff] }
 0x179   : > { %v1899_v23 = vadd.f32 %v1883_v49, %v1846_v37  ;;  %v2044_v21 = vmul.f32 %v4004_v59, %v4169_v48  ;;  %2960 = vmatmul.mubr.msk.bf16.gmra.mrb[28].mxu0 %vm413_vm1, %v3130_v50  ;;  %v2163_v60 = vadd.f32 %v2147_v20, %v2110_v44  ;;  %v2096_v51 = vmul.f32 %v3945_v3, %v2075_v53  ;;  %v2077_v31 = vld [vmem:[#allocation2 + $0x208] sm:$0xff] }
 0x17a   : > { %v2164_v9 = vadd.f32 %v2148_v12, %v2111_v63  ;;  %v1900_v10 = vadd.f32 %v1884_v40, %v1847_v52  ;;  %v2097_v32 = vmul.f32 %v3945_v3, %v2076_v58  ;;  %v2149_v19 = vmul.f32 %v4025_v14, %v2128_v15 }
 0x17b   : > { %v1952_v17 = vadd.f32 %v1936_v57, %v1899_v23  ;;  %v1719_v7 = vmul.f32 %v3882_v41, %v4114_v25  ;;  %v2179_v0 = vmax.f32 %v2163_v60, 0.0  ;;  %v1720_v20 = vmul.f32 %v3882_v41, %v4119_v30  ;;  %v2078_v57 = vld [vmem:[#allocation2 + $0x210] sm:$0xff] }
 0x17c   : > { %v2180_v28 = vmax.f32 %v2164_v9, 0.0  ;;  %v1953_v61 = vadd.f32 %v1937_v45, %v1900_v10  ;;  %v1779_v6 = vmul.f32 %v3897_v2, %v4121_v43  ;;  %v1780_v46 = vmul.f32 %v3897_v2, %v4128_v11 }
 0x17d   : > { %v2005_v12 = vadd.f32 %v1989_v54, %v1952_v17  ;;  %v1742_v4 = vadd.f32 %v3891_v16, %v1719_v7  ;;  %v1743_v35 = vadd.f32 %v3891_v16, %v1720_v20  ;;  %v1832_v25 = vmul.f32 %v3906_v36, %v4134_v22 }
 0x17e   : > { %v2191_v39 = vpack.c.bf16 %v2180_v28, %v2179_v0  ;;  %v2006_v33 = vadd.f32 %v1990_v26, %v1953_v61  ;;  %v1833_v30 = vmul.f32 %v3906_v36, %v4136_v18  ;;  %v1885_v29 = vmul.f32 %v3977_v13, %v2022_v27  ;;  %v2131_v28 = vld [vmem:[#allocation2 + $0x211] sm:$0xff] }
 0x17f   : > { %v2059_v47 = vadd.f32 %v2043_v1, %v2005_v12  ;;  %v1795_v8 = vadd.f32 %v1779_v6, %v1742_v4  ;;  %v2150_v62 = vmul.f32 %v4025_v14, %v2129_v56  ;;  %v1796_v11 = vadd.f32 %v1780_v46, %v1743_v35 }
 0x180   : > { %2987 = vmatprep.mubr.bf16.mxu1 %v2191_v39  ;;  %v2060_v43 = vadd.f32 %v2044_v21, %v2006_v33  ;;  %v1886_v5 = vmul.f32 %v3977_v13, %v4169_v48  ;;  %v1938_v22 = vmul.f32 %v3920_v24, %v2075_v53  ;;  %v1939_v18 = vmul.f32 %v3920_v24, %v2076_v58 }
 0x181   : > { %v2112_v49 = vadd.f32 %v2096_v51, %v2059_v47  ;;  %v1848_v50 = vadd.f32 %v1832_v25, %v1795_v8  ;;  %v1849_v40 = vadd.f32 %v1833_v30, %v1796_v11  ;;  %v1991_v37 = vmul.f32 %v3990_v38, %v2128_v15 }
 0x182   : > { %v2113_v42 = vadd.f32 %v2097_v32, %v2060_v43  ;;  %v1992_v63 = vmul.f32 %v3990_v38, %v2129_v56  ;;  %v2045_v52 = vmul.f32 %v4004_v59, %v2024_v34  ;;  %v2046_v26 = vmul.f32 %v4004_v59, %v2025_v55  ;;  %v2130_v32 = vld [vmem:[#allocation2 + $0x209] sm:$0xff] }
 0x183   : > { %v2165_v45 = vadd.f32 %v2149_v19, %v2112_v49  ;;  %v1901_v44 = vadd.f32 %v1885_v29, %v1848_v50  ;;  %v1902_v23 = vadd.f32 %v1886_v5, %v1849_v40  ;;  %v2098_v1 = vmul.f32 %v3945_v3, %v2077_v31  ;;  %v3148_v40 = vld [vmem:[#allocation2] sm:$0xff] }
 0x184   : > { %v2166_v54 = vadd.f32 %v2150_v62, %v2113_v42  ;;  %v2099_v9 = vmul.f32 %v3945_v3, %v2078_v57  ;;  %v1721_v10 = vmul.f32 %v3882_v41, %v2022_v27  ;;  %v1722_v19 = vmul.f32 %v3882_v41, %v4169_v48  ;;  %v2027_v62 = vld [vmem:[#allocation2 + $0x22f] sm:$0xff] }
 0x185   : > { %v2181_v21 = vmax.f32 %v2165_v45, 0.0  ;;  %v1954_v60 = vadd.f32 %v1938_v22, %v1901_v44  ;;  %v1955_v17 = vadd.f32 %v1939_v18, %v1902_v23  ;;  %v1781_v7 = vmul.f32 %v3897_v2, %v2075_v53  ;;  %v2132_v42 = vld [vmem:[#allocation2 + $0x229] sm:$0xff] }
 0x186   : > { %v2182_v51 = vmax.f32 %v2166_v54, 0.0  ;;  %v1744_v61 = vadd.f32 %v3891_v16, %v1721_v10  ;;  %v1782_v20 = vmul.f32 %v3897_v2, %v2076_v58  ;;  %v1834_v12 = vmul.f32 %v3906_v36, %v2128_v15  ;;  %v3132_v10 = vld [vmem:[%s3227_s14 + $0x50] sm:$0xff]  }
 0x187   : > { %v2007_v0 = vadd.f32 %v1991_v37, %v1954_v60  ;;  %v2008_v6 = vadd.f32 %v1992_v63, %v1955_v17  ;;  %v1745_v27 = vadd.f32 %v3891_v16, %v1722_v19  ;;  %v1835_v46 = vmul.f32 %v3906_v36, %v2129_v56  ;;  %v2026_v56 = vld [vmem:[#allocation2 + $0x227] sm:$0xff]  ;;  %v2133_v37 = vld [vmem:[#allocation2 + $0x231] sm:$0xff] }
 0x188   : > { %v2192_v4 = vpack.c.bf16 %v2182_v51, %v2181_v21  ;;  %v2151_v33 = vmul.f32 %v4025_v14, %v2130_v32  ;;  %v1797_v41 = vadd.f32 %v1781_v7, %v1744_v61  ;;  %v1887_v48 = vmul.f32 %v3977_v13, %v2024_v34  ;;  %v3129_v21 = vld [vmem:[%s3227_s14 + $0x40] sm:$0xff]   ;;  %v3135_v17 = vld [vmem:[%s3227_s14 + $0x68] sm:$0xff]   ;;  %v3137_v19 = vld [vmem:[%s3227_s14 + $0x78] sm:$0xff]  }
 0x189   : > { %v2061_v39 = vadd.f32 %v2045_v52, %v2007_v0  ;;  %v2062_v53 = vadd.f32 %v2046_v26, %v2008_v6  ;;  %v2152_v35 = vmul.f32 %v4025_v14, %v2131_v28  ;;  %v1798_v25 = vadd.f32 %v1782_v20, %v1745_v27  ;;  %v3134_v51 = vld [vmem:[%s3227_s14 + $0x60] sm:$0xff]  }
 0x18a   : > { %2988 = vmatmul.mubr.bf16.gmra.mrb[24].mxu1 %v2192_v4  ;;  %v1888_v2 = vmul.f32 %v3977_v13, %v2025_v55  ;;  %v1850_v15 = vadd.f32 %v1834_v12, %v1797_v41  ;;  %v1940_v47 = vmul.f32 %v3920_v24, %v2077_v31  ;;  %v1941_v36 = vmul.f32 %v3920_v24, %v2078_v57  ;;  %v4248_v7 = vld [vmem:[%s4328_s6] ss:$0 sm:$0xff] }
 0x18b   : > { %v2114_v58 = vadd.f32 %v2098_v1, %v2061_v39  ;;  %v2115_v16 = vadd.f32 %v2099_v9, %v2062_v53  ;;  %v1851_v8 = vadd.f32 %v1835_v46, %v1798_v25  ;;  %v1993_v43 = vmul.f32 %v3990_v38, %v2130_v32  ;;  %v3131_v9 = vld [vmem:[%s3227_s14 + $0x48] sm:$0xff]   ;;  %v3136_v32 = vld [vmem:[%s3227_s14 + $0x70] sm:$0xff]  }
 0x18c   : > { %v1903_v29 = vadd.f32 %v1887_v48, %v1850_v15  ;;  %v1994_v34 = vmul.f32 %v3990_v38, %v2131_v28  ;;  %v2047_v50 = vmul.f32 %v4004_v59, %v2026_v56  ;;  %v2048_v31 = vmul.f32 %v4004_v59, %v2027_v62 }
 0x18d   : > { %v2167_v30 = vadd.f32 %v2151_v33, %v2114_v58  ;;  %v2168_v11 = vadd.f32 %v2152_v35, %v2115_v16  ;;  %v1904_v5 = vadd.f32 %v1888_v2, %v1851_v8  ;;  %v2100_v18 = vmul.f32 %v3148_v40, %v3945_v3 }
 0x18e   : > { %v1956_v13 = vadd.f32 %v1940_v47, %v1903_v29  ;;  %v2153_v38 = vmul.f32 %v4025_v14, %v2132_v42  ;;  %v2154_v52 = vmul.f32 %v4025_v14, %v2133_v37  ;;  %v3133_v14 = vld [vmem:[%s3227_s14 + $0x58] sm:$0xff]  }
 0x18f   : > { %v2183_v49 = vmax.f32 %v2167_v30, 0.0  ;;  %v2184_v22 = vmax.f32 %v2168_v11, 0.0  ;;  %v1957_v55 = vadd.f32 %v1941_v36, %v1904_v5 }
 0x190   : > { %v2009_v24 = vadd.f32 %v1993_v43, %v1956_v13 }
 0x191   : > { %v2193_v57 = vpack.c.bf16 %v2184_v22, %v2183_v49  ;;  %v2010_v45 = vadd.f32 %v1994_v34, %v1957_v55 }
 0x192   : > { %v2063_v44 = vadd.f32 %v2047_v50, %v2009_v24 }
 0x193   : > { %2991 = vmatprep.mubr.bf16.mxu1 %v2193_v57  ;;  %v2064_v63 = vadd.f32 %v2048_v31, %v2010_v45 }
 0x194   : > { %v2116_v59 = vadd.f32 %v2100_v18, %v2063_v44 }
 0x195   : > { %v2117_v54 = vadd.f32 %v2100_v18, %v2064_v63 }
 0x196   : > { %v2169_v23 = vadd.f32 %v2153_v38, %v2116_v59 }
 0x197   : > { %v2170_v26 = vadd.f32 %v2154_v52, %v2117_v54 }
 0x198   : > { %v2185_v3 = vmax.f32 %v2169_v23, 0.0 }
 0x199   : > { %v2186_v1 = vmax.f32 %v2170_v26, 0.0 }
 0x19b   : > { %v2194_v60 = vpack.c.bf16 %v2186_v1, %v2185_v3 }
 0x19d   : > { %2992 = vmatmul.mubr.bf16.gmra.mrb[28].mxu1 %v2194_v60 }
 0x19e   : > { %2997 = vmatprep.mubr.msk.bf16.mxu1 %vm413_vm1, %v3129_v21 }
 0x1a5   : > { %2998 = vmatmul.mubr.msk.bf16.vlgmr.msra.gmra.mrb[16].mxu1 %vm413_vm1, %v3131_v9 }
 0x1a6   : > { %3001 = vmatprep.mubr.msk.bf16.mxu1 %vm413_vm1, %v3132_v10 }
 0x1ad   : > { %3002 = vmatmul.mubr.msk.bf16.gmra.mrb[20].mxu1 %vm413_vm1, %v3133_v14 }
 0x1ae   : > { %3005 = vmatprep.mubr.msk.bf16.mxu1 %vm413_vm1, %v3134_v51 }
 0x1b5   : > { %3006 = vmatmul.mubr.msk.bf16.gmra.mrb[24].mxu1 %vm413_vm1, %v3135_v17 }
 0x1b6   : > { %3009 = vmatprep.mubr.msk.bf16.mxu1 %vm413_vm1, %v3136_v32 }
 0x1bd   : > { %3010 = vmatmul.mubr.msk.bf16.gmra.mrb[28].mxu1 %vm413_vm1, %v3137_v19 }
 0x234   : > { %v2949_v0 = vpop.f32.mrb[16].mxu0 }
 0x235   : > { %v3013_v28 = vadd.f32 %v2949_v0, %v4248_v7  ;;  %v1590_v61 = vpop.f32.mrb[17].mxu0 }
 0x236   : > { %v3014_v20 = vadd.f32 %v4248_v7, %v1590_v61  ;;  %v2950_v12 = vpop.f32.mrb[18].mxu0 }
 0x237   : > { %1671 = vst [vmem:[%s4253_s22 + $0x10] sm:$0xff] %v3013_v28  ;;  %v3015_v4 = vadd.f32 %v2950_v12, %v4248_v7  ;;  %v1593_v6 = vpop.f32.mrb[19].mxu0 }
 0x238   : > { %1669 = vst [vmem:[%s4253_s22] sm:$0xff] %v3014_v20  ;;  %v3016_v27 = vadd.f32 %v4248_v7, %v1593_v6 }
 0x239   : > { %1672 = vst [vmem:[%s4253_s22 + $0x18] sm:$0xff] %v3015_v4 }
 0x23a   : > { %1670 = vst [vmem:[%s4253_s22 + $0x8] sm:$0xff] %v3016_v27 }
 0x23c   : > { %v2953_v46 = vpop.f32.mrb[20].mxu0 }
 0x23d   : > { %v3017_v39 = vadd.f32 %v2953_v46, %v4248_v7  ;;  %v1606_v33 = vpop.f32.mrb[21].mxu0 }
 0x23e   : > { %v3018_v41 = vadd.f32 %v4248_v7, %v1606_v33  ;;  %v2954_v48 = vpop.f32.mrb[22].mxu0 }
 0x23f   : > { %1675 = vst [vmem:[%s4253_s22 + $0x30] sm:$0xff] %v3017_v39  ;;  %v3019_v53 = vadd.f32 %v2954_v48, %v4248_v7  ;;  %v1609_v35 = vpop.f32.mrb[23].mxu0 }
 0x240   : > { %1673 = vst [vmem:[%s4253_s22 + $0x20] sm:$0xff] %v3018_v41  ;;  %v3020_v25 = vadd.f32 %v4248_v7, %v1609_v35 }
 0x241   : > { %1676 = vst [vmem:[%s4253_s22 + $0x38] sm:$0xff] %v3019_v53 }
 0x242   : > { %1674 = vst [vmem:[%s4253_s22 + $0x28] sm:$0xff] %v3020_v25 }
 0x244   : > { %v2957_v2 = vpop.f32.mrb[24].mxu0 }
 0x245   : > { %v3021_v58 = vadd.f32 %v2957_v2, %v4248_v7  ;;  %v1622_v15 = vpop.f32.mrb[25].mxu0 }
 0x246   : > { %v3022_v47 = vadd.f32 %v4248_v7, %v1622_v15  ;;  %v2958_v16 = vpop.f32.mrb[26].mxu0 }
 0x247   : > { %1679 = vst [vmem:[%s4253_s22 + $0x50] sm:$0xff] %v3021_v58  ;;  %v3023_v8 = vadd.f32 %v2958_v16, %v4248_v7  ;;  %v1625_v36 = vpop.f32.mrb[27].mxu0 }
 0x248   : > { %1677 = vst [vmem:[%s4253_s22 + $0x40] sm:$0xff] %v3022_v47  ;;  %v3024_v56 = vadd.f32 %v4248_v7, %v1625_v36 }
 0x249   : > { %1680 = vst [vmem:[%s4253_s22 + $0x58] sm:$0xff] %v3023_v8 }
 0x24a   : > { %1678 = vst [vmem:[%s4253_s22 + $0x48] sm:$0xff] %v3024_v56 }
 0x24c   : > { %v2961_v30 = vpop.f32.mrb[28].mxu0 }
 0x24d   : > { %v3025_v29 = vadd.f32 %v2961_v30, %v4248_v7  ;;  %v1638_v43 = vpop.f32.mrb[29].mxu0 }
 0x24e   : > { %v3026_v62 = vadd.f32 %v4248_v7, %v1638_v43  ;;  %v2962_v11 = vpop.f32.mrb[30].mxu0 }
 0x24f   : > { %1683 = vst [vmem:[%s4253_s22 + $0x70] sm:$0xff] %v3025_v29  ;;  %v3027_v5 = vadd.f32 %v2962_v11, %v4248_v7  ;;  %v1641_v34 = vpop.f32.mrb[31].mxu0 }
 0x250   : > { %1681 = vst [vmem:[%s4253_s22 + $0x60] sm:$0xff] %v3026_v62  ;;  %v3028_v49 = vadd.f32 %v4248_v7, %v1641_v34 }
 0x251   : > { %1684 = vst [vmem:[%s4253_s22 + $0x78] sm:$0xff] %v3027_v5 }
 0x252   : > { %1682 = vst [vmem:[%s4253_s22 + $0x68] sm:$0xff] %v3028_v49 }
 0x278   : > { %v2999_v13 = vpop.f32.mrb[16].mxu1 }
 0x279   : > { %v3029_v50 = vadd.f32 %v2999_v13, %v4248_v7  ;;  %v2481_v22 = vpop.f32.mrb[17].mxu1 }
 0x27a   : > { %v3030_v55 = vadd.f32 %v4248_v7, %v2481_v22  ;;  %v3000_v31 = vpop.f32.mrb[18].mxu1 }
 0x27b   : > { %2791 = vst [vmem:[%s4253_s22 + $0x90] sm:$0xff] %v3029_v50  ;;  %v3031_v42 = vadd.f32 %v3000_v31, %v4248_v7  ;;  %v2484_v24 = vpop.f32.mrb[19].mxu1 }
 0x27c   : > { %2789 = vst [vmem:[%s4253_s22 + $0x80] sm:$0xff] %v3030_v55  ;;  %v3032_v40 = vadd.f32 %v4248_v7, %v2484_v24 }
 0x27d   : > { %2792 = vst [vmem:[%s4253_s22 + $0x98] sm:$0xff] %v3031_v42 }
 0x27e   : > { %2790 = vst [vmem:[%s4253_s22 + $0x88] sm:$0xff] %v3032_v40 }
 0x280   : > { %v3003_v18 = vpop.f32.mrb[20].mxu1 }
 0x281   : > { %v3033_v37 = vadd.f32 %v3003_v18, %v4248_v7  ;;  %v2497_v57 = vpop.f32.mrb[21].mxu1 }
 0x282   : > { %v3034_v45 = vadd.f32 %v4248_v7, %v2497_v57  ;;  %v3004_v44 = vpop.f32.mrb[22].mxu1 }
 0x283   : > { %2795 = vst [vmem:[%s4253_s22 + $0xb0] sm:$0xff] %v3033_v37  ;;  %v3035_v38 = vadd.f32 %v3004_v44, %v4248_v7  ;;  %v2500_v63 = vpop.f32.mrb[23].mxu1 }
 0x284   : > { %2793 = vst [vmem:[%s4253_s22 + $0xa0] sm:$0xff] %v3034_v45  ;;  %v3036_v52 = vadd.f32 %v4248_v7, %v2500_v63 }
 0x285   : > { %2796 = vst [vmem:[%s4253_s22 + $0xb8] sm:$0xff] %v3035_v38 }
 0x286   : > { %2794 = vst [vmem:[%s4253_s22 + $0xa8] sm:$0xff] %v3036_v52 }
 0x288   : > { %v3007_v59 = vpop.f32.mrb[24].mxu1 }
 0x289   : > { %v3037_v54 = vadd.f32 %v3007_v59, %v4248_v7  ;;  %v2513_v23 = vpop.f32.mrb[25].mxu1 }
 0x28a   : > { %v3038_v26 = vadd.f32 %v4248_v7, %v2513_v23  ;;  %v3008_v3 = vpop.f32.mrb[26].mxu1 }
 0x28b   : > { %2799 = vst [vmem:[%s4253_s22 + $0xd0] sm:$0xff] %v3037_v54  ;;  %v3039_v1 = vadd.f32 %v3008_v3, %v4248_v7  ;;  %v2516_v21 = vpop.f32.mrb[27].mxu1 }
 0x28c   : > { %2797 = vst [vmem:[%s4253_s22 + $0xc0] sm:$0xff] %v3038_v26  ;;  %v3040_v60 = vadd.f32 %v4248_v7, %v2516_v21 }
 0x28d   : > { %2800 = vst [vmem:[%s4253_s22 + $0xd8] sm:$0xff] %v3039_v1 }
 0x28e   : > { %2798 = vst [vmem:[%s4253_s22 + $0xc8] sm:$0xff] %v3040_v60 }
 0x290   : > { %v3011_v9 = vpop.f32.mrb[28].mxu1 }
 0x291   : > { %v3041_v10 = vadd.f32 %v3011_v9, %v4248_v7  ;;  %v2529_v14 = vpop.f32.mrb[29].mxu1 }
 0x292   : > { %v3042_v51 = vadd.f32 %v4248_v7, %v2529_v14  ;;  %v3012_v17 = vpop.f32.mrb[30].mxu1 }
 0x293   : > { %2803 = vst [vmem:[%s4253_s22 + $0xf0] sm:$0xff] %v3041_v10  ;;  %v3043_v32 = vadd.f32 %v3012_v17, %v4248_v7  ;;  %v2532_v19 = vpop.f32.mrb[31].mxu1 }
 0x294   : > { %2801 = vst [vmem:[%s4253_s22 + $0xe0] sm:$0xff] %v3042_v51  ;;  %v3044_v0 = vadd.f32 %v4248_v7, %v2532_v19 }
 0x295   : > { %2804 = vst [vmem:[%s4253_s22 + $0xf8] sm:$0xff] %v3043_v32 }
 0x296   : > { %2802 = vst [vmem:[%s4253_s22 + $0xe8] sm:$0xff] %v3044_v0 }
 0x297 PF: > { %s18_s27 = sadd.s32 1, %s3155_s27  }
 0x298   : > { %p15_p4 = scmp.ge.s32.totalorder %s18_s27, 4  }
 0x29a   :  { %17 = sbr.rel (!%p15_p4) target bundleno = 1 (0x1), region = 92 }

</bundles_post_ra>
